<compile_context>
chip_gen: v7x
topology: tpu7x:2x2x1
jax: 0.10.0
libtpu: 0.0.40
codegen_flags: <defaults>
</compile_context>

<pallas_src>
import functools

import jax
import jax.numpy as jnp
from jax import lax
from jax.experimental import pallas as pl
from jax.experimental.pallas import tpu as pltpu

# Explicit VMEM cap with headroom: above v5e's 16 MiB scoped default, below v7x's 64 MiB physical.
VMEM_LIMIT_BYTES = 48 * 1024 * 1024


def _round_up(x, m):
    return ((x + m - 1) // m) * m


def _pick_tile(dim, candidates):
    for c in candidates:
        if c <= dim and dim % c == 0:
            return c
    return dim


def _largest_divisor_leq(n, cap):
    for d in range(min(cap, n), 0, -1):
        if n % d == 0:
            return d
    return 1


# ----------------------------------------------------------------------------
# Generic tiled GEMM + bias kernel (input projection and vocab head).
# x: bf16, w: bf16, b: f32, out: f32.  Grid (N_tiles, M_tiles), M innermost.
# ----------------------------------------------------------------------------
def _gemm_bias_kernel(x_ref, w_ref, b_ref, o_ref):
    acc = jnp.dot(x_ref[...], w_ref[...], preferred_element_type=jnp.float32)
    o_ref[...] = (acc + b_ref[...]).astype(o_ref.dtype)


def gemm_bias_pallas(x, w, b, out_dtype=jnp.float32):
    """x: (M, K) bf16, w: (K, N) bf16, b: (1, N) f32 -> (M, N) f32.

    M innermost in the grid so each (K, tn) W block is DMA'd once and stays
    VMEM-resident while the X tiles stream past it.
    """
    M, K = x.shape
    Kw, N = w.shape
    assert K == Kw

    tm = 256 if M >= 256 else _round_up(M, 8)
    M_pad = _round_up(M, tm)
    if M_pad != M:
        x = jnp.pad(x, ((0, M_pad - M), (0, 0)))
    tn = _pick_tile(N, (512, 256, 128))

    out = pl.pallas_call(
        _gemm_bias_kernel,
        out_shape=jax.ShapeDtypeStruct((M_pad, N), out_dtype),
        grid_spec=pltpu.PrefetchScalarGridSpec(
            num_scalar_prefetch=0,
            grid=(N // tn, M_pad // tm),                        # M innermost
            in_specs=[
                pl.BlockSpec((tm, K), lambda j, i: (i, 0)),     # X tile (full K)
                pl.BlockSpec((K, tn), lambda j, i: (0, j)),     # W tile: constant over i
                pl.BlockSpec((1, tn), lambda j, i: (0, j)),     # bias tile
            ],
            out_specs=pl.BlockSpec((tm, tn), lambda j, i: (i, j)),
        ),
        compiler_params=pltpu.CompilerParams(
            dimension_semantics=("parallel", "parallel"),
            vmem_limit_bytes=VMEM_LIMIT_BYTES,
        ),
    )(x, w, b)
    return out[:M] if M_pad != M else out


# ----------------------------------------------------------------------------
# LSTM recurrence: grid = (batch_blocks, time_chunks), time innermost.
# xg_ref  : (T_chunk, B_blk, 4H)  precomputed x @ W_ih^T + (b_ih + b_hh)   (f32)
# whh_ref : (H, 4H)               recurrent weights (bf16), constant index -> resident
# hout_ref: (T_chunk, B_blk, H)   hidden states (bf16) consumed by the head GEMM
# h_sc/c_sc: VMEM scratch, persist across grid steps.
# ----------------------------------------------------------------------------
def _lstm_recurrence_kernel(xg_ref, whh_ref, hout_ref, h_sc, c_sc):
    # torch init_hidden: zeros for both h and c, once per batch block.
    @pl.when(pl.program_id(1) == 0)
    def _():
        h_sc[...] = jnp.zeros_like(h_sc)
        c_sc[...] = jnp.zeros_like(c_sc)

    t_chunk = xg_ref.shape[0]
    H = h_sc.shape[1]            # padded H (multiple of 128) -> lane-aligned gate slices

    def step(t, carry):
        h_prev = h_sc[...]
        c_prev = c_sc[...]
        # gates = (x_t @ W_ih^T + b) [precomputed] + h_{t-1} @ W_hh^T
        # W_hh is read through the ref each step (not hoisted); MXU reads operands from VMEM.
        gates = xg_ref[t] + jnp.dot(
            h_prev.astype(jnp.bfloat16), whh_ref[...],
            preferred_element_type=jnp.float32)

        # PyTorch gate order: i, f, g, o.  H padded -> 128-lane aligned slices.
        # (Gate nonlinearities kept in f32: safe on v5e which lacks bf16 EUP/VPU.)
        i_g = jax.nn.sigmoid(gates[:, 0 * H:1 * H])
        f_g = jax.nn.sigmoid(gates[:, 1 * H:2 * H])
        g_g = jnp.tanh(gates[:, 2 * H:3 * H])
        o_g = jax.nn.sigmoid(gates[:, 3 * H:4 * H])

        c_new = f_g * c_prev + i_g * g_g
        h_new = o_g * jnp.tanh(c_new)

        c_sc[...] = c_new
        h_sc[...] = h_new
        hout_ref[t] = h_new.astype(hout_ref.dtype)
        return carry

    lax.fori_loop(0, t_chunk, step, 0, unroll=True)


def lstm_recurrence_pallas(xg_tbg, w_hh_t_bf16, t_chunk_max=8):
    """xg_tbg: (T, B, 4H) f32 -> (T, B, H) bf16 hidden states (padded shapes)."""
    T, B, G = xg_tbg.shape
    H = G // 4
    t_chunk = _largest_divisor_leq(T, t_chunk_max)
    # Batch-split only when each half stays >= 16 rows (bf16 sublane-tile friendly).
    b_blocks = 2 if (B % 32 == 0) else 1
    b_blk = B // b_blocks

    return pl.pallas_call(
        _lstm_recurrence_kernel,
        out_shape=jax.ShapeDtypeStruct((T, B, H), jnp.bfloat16),
        grid_spec=pltpu.PrefetchScalarGridSpec(
            num_scalar_prefetch=0,
            grid=(b_blocks, T // t_chunk),
            in_specs=[
                pl.BlockSpec((t_chunk, b_blk, G), lambda b, i: (i, b, 0)),
                pl.BlockSpec((H, G), lambda b, i: (0, 0)),   # constant -> fetched once
            ],
            out_specs=pl.BlockSpec((t_chunk, b_blk, H), lambda b, i: (i, b, 0)),
            scratch_shapes=[
                pltpu.VMEM((b_blk, H), jnp.float32),   # h  (persists across time chunks)
                pltpu.VMEM((b_blk, H), jnp.float32),   # c
            ],
        ),
        compiler_params=pltpu.CompilerParams(
            # Batch blocks independent -> parallel (v7x megacore); time is strictly serial.
            dimension_semantics=("parallel", "arbitrary"),
            vmem_limit_bytes=VMEM_LIMIT_BYTES,
        ),
    )(xg_tbg, w_hh_t_bf16)


# ----------------------------------------------------------------------------
# Model wrapper (PyTorch-equivalent parameters + forward).
# ----------------------------------------------------------------------------
class DecoderRNNPallas:
    """JAX/Pallas reimplementation of DecoderRNN.forward (num_layers=1)."""

    def __init__(self, embed_size, hidden_size, vocab_size, key):
        self.embed_size = embed_size
        self.hidden_size = hidden_size
        self.vocab_size = vocab_size

        ks = jax.random.split(key, 7)
        scale = 0.1
        E, H, V = embed_size, hidden_size, vocab_size

        # Master f32 parameters (used by the pure-JAX reference).
        self.embedding = scale * jax.random.normal(ks[0], (V, E), jnp.float32)
        self.w_ih_t = scale * jax.random.normal(ks[1], (E, 4 * H), jnp.float32)
        self.w_hh_t = scale * jax.random.normal(ks[2], (H, 4 * H), jnp.float32)
        self.b_ih = scale * jax.random.normal(ks[3], (4 * H,), jnp.float32)
        self.b_hh = scale * jax.random.normal(ks[4], (4 * H,), jnp.float32)
        self.w_lin_t = scale * jax.random.normal(ks[5], (H, V), jnp.float32)
        self.b_lin = scale * jax.random.normal(ks[6], (V,), jnp.float32)

        # ---- Padded / bf16 parameters for the kernels ----
        self.E_pad = _round_up(E, 128)
        self.H_pad = _round_up(H, 128)
        self.V_pad = _round_up(V, 256)     # multiple of 256 so the head tn never collapses
        E_pad, H_pad, V_pad = self.E_pad, self.H_pad, self.V_pad

        def pad_gate_cols(w_t):
            # (K, 4H) -> (K, 4*H_pad): pad each gate block independently.
            K = w_t.shape[0]
            w4 = w_t.reshape(K, 4, H)
            w4 = jnp.pad(w4, ((0, 0), (0, 0), (0, H_pad - H)))
            return w4.reshape(K, 4 * H_pad)

        self.w_ih_t_bf16 = jnp.pad(
            pad_gate_cols(self.w_ih_t), ((0, E_pad - E), (0, 0))).astype(jnp.bfloat16)
        self.w_hh_t_bf16 = jnp.pad(
            pad_gate_cols(self.w_hh_t), ((0, H_pad - H), (0, 0))).astype(jnp.bfloat16)
        b_comb = (self.b_ih + self.b_hh).reshape(4, H)
        self.b_gates_pad = jnp.pad(
            b_comb, ((0, 0), (0, H_pad - H))).reshape(1, 4 * H_pad).astype(jnp.float32)
        self.w_lin_t_bf16 = jnp.pad(
            self.w_lin_t, ((0, H_pad - H), (0, V_pad - V))).astype(jnp.bfloat16)
        self.b_lin_pad = jnp.pad(
            self.b_lin.reshape(1, V), ((0, 0), (0, V_pad - V))).astype(jnp.float32)

    @functools.partial(jax.jit, static_argnums=0)
    def forward(self, features, captions):
        # features: (B, embed_size) f32, captions: (B, T_cap) int32
        B = features.shape[0]
        E, H_pad, V_pad = self.embed_size, self.H_pad, self.V_pad

        # Glue (embedding gather / concat) in plain JAX.
        captions = captions[:, :-1]                                        # drop last token
        embeds = jnp.take(self.embedding, captions, axis=0)                # (B, T-1, E)
        inputs = jnp.concatenate([features[:, None, :], embeds], axis=1)   # (B, T, E)
        T = inputs.shape[1]

        B_pad = _round_up(max(B, 8), 8)
        inputs_tbe = jnp.transpose(inputs, (1, 0, 2))                      # (T, B, E)
        inputs_tbe = jnp.pad(
            inputs_tbe, ((0, 0), (0, B_pad - B), (0, self.E_pad - E))
        ).astype(jnp.bfloat16)                                             # (T, B_pad, E_pad)

        # Phase 1: input projection for all timesteps as one GEMM (bf16 operands, f32 acc).
        x_flat = inputs_tbe.reshape(T * B_pad, self.E_pad)
        xg_flat = gemm_bias_pallas(x_flat, self.w_ih_t_bf16, self.b_gates_pad)
        xg = xg_flat.reshape(T, B_pad, 4 * H_pad)                          # f32

        # Phase 2: sequential LSTM recurrence, time-chunked & streamed through VMEM.
        h_all = lstm_recurrence_pallas(xg, self.w_hh_t_bf16)               # (T, B_pad, H_pad) bf16

        # Phase 3: vocab head.  Transpose the SMALL hidden slab up front so the big logits
        # slab is written directly in (B, T, V) layout (no post-GEMM transpose).
        h_bt = jnp.transpose(h_all, (1, 0, 2)).reshape(B_pad * T, H_pad)   # bf16
        logits_flat = gemm_bias_pallas(h_bt, self.w_lin_t_bf16, self.b_lin_pad)
        logits = logits_flat.reshape(B_pad, T, V_pad)
        return logits[:B, :, :self.vocab_size]                             # (B, T, V) f32

    # Pure-JAX f32 reference (mirrors PyTorch LSTM + Linear semantics) for validation.
    def reference_forward(self, features, captions):
        H = self.hidden_size
        captions = captions[:, :-1]
        embeds = jnp.take(self.embedding, captions, axis=0)
        inputs = jnp.concatenate([features[:, None, :], embeds], axis=1)   # (B, T, E)
        B, T, _ = inputs.shape
        h = jnp.zeros((B, H), jnp.float32)
        c = jnp.zeros((B, H), jnp.float32)
        outs = []
        for t in range(T):
            x = inputs[:, t, :]
            gates = x @ self.w_ih_t + h @ self.w_hh_t + self.b_ih + self.b_hh
            i_g = jax.nn.sigmoid(gates[:, 0 * H:1 * H])
            f_g = jax.nn.sigmoid(gates[:, 1 * H:2 * H])
            g_g = jnp.tanh(gates[:, 2 * H:3 * H])
            o_g = jax.nn.sigmoid(gates[:, 3 * H:4 * H])
            c = f_g * c + i_g * g_g
            h = o_g * jnp.tanh(c)
            outs.append(h @ self.w_lin_t + self.b_lin)
        return jnp.stack(outs, axis=1)                                     # (B, T, V)


# TODO(synk): DecoderRNN.sample (greedy autoregressive decoding) is not implemented;
#             only forward() is translated.

if __name__ == "__main__":
    B = 2          # batch
    E = 32         # embed_size
    H = 32         # hidden_size
    V = 64         # vocab_size
    T_CAP = 8      # caption length (sequence length == T_CAP after concat/drop)

    key = jax.random.PRNGKey(0)
    k_params, k_feat, k_cap = jax.random.split(key, 3)

    model = DecoderRNNPallas(E, H, V, k_params)

    features = jax.random.normal(k_feat, (B, E), jnp.float32)
    captions = jax.random.randint(k_cap, (B, T_CAP), 0, V, jnp.int32)

    out = model.forward(features, captions)
    jax.block_until_ready(out)

    assert out.shape == (B, T_CAP, V), out.shape
    assert out.dtype == jnp.float32

    ref = model.reference_forward(features, captions)
    max_err = float(jnp.max(jnp.abs(out - ref)))
    # bf16 matmul operands with f32 accumulation vs. pure-f32 reference.
    assert max_err < 2e-2, f"mismatch vs reference: {max_err}"

    print("KERNEL_OK")
</pallas_src>

<mosaic_0001>
module attributes {stable_mosaic.version = 11 : i64} {
  func.func @_gemm_bias_kernel(%arg0: i32, %arg1: i32, %arg2: memref<64x128xbf16, #tpu.memory_space<vmem>>, %arg3: memref<128x256xbf16, #tpu.memory_space<vmem>>, %arg4: memref<1x256xf32, #tpu.memory_space<vmem>>, %arg5: memref<64x256xf32, #tpu.memory_space<vmem>>) attributes {dimension_semantics = [#tpu.dimension_semantics<parallel>, #tpu.dimension_semantics<parallel>], iteration_bounds = array<i64: 1, 1>, scalar_prefetch = 0 : i64, scratch_operands = 0 : i64, tpu.core_type = #tpu.core_type<tc>, window_params = [{transform_indices = @transform_0, window_bounds = array<i64: 64, 128>}, {transform_indices = @transform_1, window_bounds = array<i64: 128, 256>}, {transform_indices = @transform_2, window_bounds = array<i64: 1, 256>}, {transform_indices = @transform_3, window_bounds = array<i64: 64, 256>}]} {
    %c0 = arith.constant 0 : index
    %c0_0 = arith.constant 0 : index
    %0 = vector.load %arg2[%c0, %c0_0] : memref<64x128xbf16, #tpu.memory_space<vmem>>, vector<64x128xbf16>
    %c0_1 = arith.constant 0 : index
    %c0_2 = arith.constant 0 : index
    %1 = vector.load %arg3[%c0_1, %c0_2] : memref<128x256xbf16, #tpu.memory_space<vmem>>, vector<128x256xbf16>
    %cst = arith.constant dense<0.000000e+00> : vector<64x256xf32>
    %2 = tpu.matmul %0, %1, %cst {dimension_numbers = #tpu.dot_dimension_numbers<[1], [0], [0], [1], [0, 0, 1, 1], [], []>} : vector<64x128xbf16>, vector<128x256xbf16>, vector<64x256xf32> -> vector<64x256xf32>
    %c0_3 = arith.constant 0 : index
    %c0_4 = arith.constant 0 : index
    %3 = vector.load %arg4[%c0_3, %c0_4] : memref<1x256xf32, #tpu.memory_space<vmem>>, vector<1x256xf32>
    %4 = vector.broadcast %3 : vector<1x256xf32> to vector<64x256xf32>
    %5 = arith.addf %2, %4 : vector<64x256xf32>
    %c0_5 = arith.constant 0 : index
    %c0_6 = arith.constant 0 : index
    %6 = vector.load %arg5[%c0_5, %c0_6] : memref<64x256xf32, #tpu.memory_space<vmem>>, vector<64x256xf32>
    tpu.vector_store %arg5[%c0_5, %c0_6], %5 {strides = array<i32>} : memref<64x256xf32, #tpu.memory_space<vmem>>, vector<64x256xf32>,
    return
  }
  func.func @transform_0(%arg0: i32, %arg1: i32) -> (i32, i32) {
    %c0_i32 = arith.constant 0 : i32
    %c0_i32_0 = arith.constant 0 : i32
    return %arg1, %c0_i32 : i32, i32
  }
  func.func @transform_1(%arg0: i32, %arg1: i32) -> (i32, i32) {
    %c0_i32 = arith.constant 0 : i32
    %c0_i32_0 = arith.constant 0 : i32
    return %c0_i32, %arg0 : i32, i32
  }
  func.func @transform_2(%arg0: i32, %arg1: i32) -> (i32, i32) {
    %c0_i32 = arith.constant 0 : i32
    %c0_i32_0 = arith.constant 0 : i32
    return %c0_i32, %arg0 : i32, i32
  }
  func.func @transform_3(%arg0: i32, %arg1: i32) -> (i32, i32) {
    %c0_i32 = arith.constant 0 : i32
    return %arg1, %arg0 : i32, i32
  }
}

module attributes {stable_mosaic.version = 11 : i64} {
  func.func @_gemm_bias_kernel(%arg0: i32, %arg1: i32, %arg2: memref<64x128xbf16, #tpu.memory_space<vmem>>, %arg3: memref<128x512xbf16, #tpu.memory_space<vmem>>, %arg4: memref<1x512xf32, #tpu.memory_space<vmem>>, %arg5: memref<64x512xf32, #tpu.memory_space<vmem>>) attributes {dimension_semantics = [#tpu.dimension_semantics<parallel>, #tpu.dimension_semantics<parallel>], iteration_bounds = array<i64: 1, 1>, scalar_prefetch = 0 : i64, scratch_operands = 0 : i64, tpu.core_type = #tpu.core_type<tc>, window_params = [{transform_indices = @transform_0, window_bounds = array<i64: 64, 128>}, {transform_indices = @transform_1, window_bounds = array<i64: 128, 512>}, {transform_indices = @transform_2, window_bounds = array<i64: 1, 512>}, {transform_indices = @transform_3, window_bounds = array<i64: 64, 512>}]} {
    %c0 = arith.constant 0 : index
    %c0_0 = arith.constant 0 : index
    %0 = vector.load %arg2[%c0, %c0_0] : memref<64x128xbf16, #tpu.memory_space<vmem>>, vector<64x128xbf16>
    %c0_1 = arith.constant 0 : index
    %c0_2 = arith.constant 0 : index
    %1 = vector.load %arg3[%c0_1, %c0_2] : memref<128x512xbf16, #tpu.memory_space<vmem>>, vector<128x512xbf16>
    %cst = arith.constant dense<0.000000e+00> : vector<64x512xf32>
    %2 = tpu.matmul %0, %1, %cst {dimension_numbers = #tpu.dot_dimension_numbers<[1], [0], [0], [1], [0, 0, 1, 1], [], []>} : vector<64x128xbf16>, vector<128x512xbf16>, vector<64x512xf32> -> vector<64x512xf32>
    %c0_3 = arith.constant 0 : index
    %c0_4 = arith.constant 0 : index
    %3 = vector.load %arg4[%c0_3, %c0_4] : memref<1x512xf32, #tpu.memory_space<vmem>>, vector<1x512xf32>
    %4 = vector.broadcast %3 : vector<1x512xf32> to vector<64x512xf32>
    %5 = arith.addf %2, %4 : vector<64x512xf32>
    %c0_5 = arith.constant 0 : index
    %c0_6 = arith.constant 0 : index
    %6 = vector.load %arg5[%c0_5, %c0_6] : memref<64x512xf32, #tpu.memory_space<vmem>>, vector<64x512xf32>
    tpu.vector_store %arg5[%c0_5, %c0_6], %5 {strides = array<i32>} : memref<64x512xf32, #tpu.memory_space<vmem>>, vector<64x512xf32>,
    return
  }
  func.func @transform_0(%arg0: i32, %arg1: i32) -> (i32, i32) {
    %c0_i32 = arith.constant 0 : i32
    %c0_i32_0 = arith.constant 0 : i32
    return %arg1, %c0_i32 : i32, i32
  }
  func.func @transform_1(%arg0: i32, %arg1: i32) -> (i32, i32) {
    %c0_i32 = arith.constant 0 : i32
    %c0_i32_0 = arith.constant 0 : i32
    return %c0_i32, %arg0 : i32, i32
  }
  func.func @transform_2(%arg0: i32, %arg1: i32) -> (i32, i32) {
    %c0_i32 = arith.constant 0 : i32
    %c0_i32_0 = arith.constant 0 : i32
    return %c0_i32, %arg0 : i32, i32
  }
  func.func @transform_3(%arg0: i32, %arg1: i32) -> (i32, i32) {
    %c0_i32 = arith.constant 0 : i32
    return %arg1, %arg0 : i32, i32
  }
}

module attributes {stable_mosaic.version = 11 : i64} {
  func.func @_lstm_recurrence_kernel(%arg0: i32, %arg1: i32, %arg2: memref<8x8x512xf32, #tpu.memory_space<vmem>>, %arg3: memref<128x512xbf16, #tpu.memory_space<vmem>>, %arg4: memref<8x8x128xbf16, #tpu.memory_space<vmem>>, %arg5: memref<8x128xf32, #tpu.memory_space<vmem>>, %arg6: memref<8x128xf32, #tpu.memory_space<vmem>>) attributes {dimension_semantics = [#tpu.dimension_semantics<parallel>, #tpu.dimension_semantics<arbitrary>], iteration_bounds = array<i64: 1, 1>, scalar_prefetch = 0 : i64, scratch_operands = 2 : i64, tpu.core_type = #tpu.core_type<tc>, window_params = [{transform_indices = @transform_0, window_bounds = array<i64: 8, 8, 512>}, {pipeline_mode = #tpu.pipeline_mode<synchronous>, transform_indices = @transform_1, window_bounds = array<i64: 128, 512>}, {transform_indices = @transform_2, window_bounds = array<i64: 8, 8, 128>}]} {
    %c0_i32 = arith.constant 0 : i32
    %0 = arith.cmpi eq, %arg1, %c0_i32 : i32
    %1 = arith.extui %0 : i1 to i32
    %c0_i32_0 = arith.constant 0 : i32
    %2 = arith.cmpi ne, %1, %c0_i32_0 : i32
    scf.if %2 {
      %cst_144 = arith.constant 0.000000e+00 : f32
      %331 = vector.broadcast %cst_144 : f32 to vector<8x128xf32>
      %c0_145 = arith.constant 0 : index
      %c0_146 = arith.constant 0 : index
      %332 = vector.load %arg5[%c0_145, %c0_146] : memref<8x128xf32, #tpu.memory_space<vmem>>, vector<8x128xf32>
      tpu.vector_store %arg5[%c0_145, %c0_146], %331 {strides = array<i32>} : memref<8x128xf32, #tpu.memory_space<vmem>>, vector<8x128xf32>,
      %cst_147 = arith.constant 0.000000e+00 : f32
      %333 = vector.broadcast %cst_147 : f32 to vector<8x128xf32>
      %c0_148 = arith.constant 0 : index
      %c0_149 = arith.constant 0 : index
      %334 = vector.load %arg6[%c0_148, %c0_149] : memref<8x128xf32, #tpu.memory_space<vmem>>, vector<8x128xf32>
      tpu.vector_store %arg6[%c0_148, %c0_149], %333 {strides = array<i32>} : memref<8x128xf32, #tpu.memory_space<vmem>>, vector<8x128xf32>,
    } else {
    }
    %c0_i32_1 = arith.constant 0 : i32
    %c0 = arith.constant 0 : index
    %c0_2 = arith.constant 0 : index
    %3 = vector.load %arg5[%c0, %c0_2] : memref<8x128xf32, #tpu.memory_space<vmem>>, vector<8x128xf32>
    %c0_3 = arith.constant 0 : index
    %c0_4 = arith.constant 0 : index
    %4 = vector.load %arg6[%c0_3, %c0_4] : memref<8x128xf32, #tpu.memory_space<vmem>>, vector<8x128xf32>
    %5 = arith.index_cast %c0_i32_1 : i32 to index
    %c0_5 = arith.constant 0 : index
    %c0_6 = arith.constant 0 : index
    %6 = vector.load %arg2[%5, %c0_5, %c0_6] : memref<8x8x512xf32, #tpu.memory_space<vmem>>, vector<1x8x512xf32>
    %7 = vector.shape_cast %6 : vector<1x8x512xf32> to vector<8x512xf32>
    %8 = arith.truncf %3 : vector<8x128xf32> to vector<8x128xbf16>
    %c0_7 = arith.constant 0 : index
    %c0_8 = arith.constant 0 : index
    %9 = vector.load %arg3[%c0_7, %c0_8] : memref<128x512xbf16, #tpu.memory_space<vmem>>, vector<128x512xbf16>
    %cst = arith.constant dense<0.000000e+00> : vector<8x512xf32>
    %10 = tpu.matmul %8, %9, %cst {dimension_numbers = #tpu.dot_dimension_numbers<[1], [0], [0], [1], [0, 0, 1, 1], [], []>} : vector<8x128xbf16>, vector<128x512xbf16>, vector<8x512xf32> -> vector<8x512xf32>
    %11 = arith.addf %7, %10 : vector<8x512xf32>
    %12 = vector.extract_strided_slice %11 {offsets = [0, 0], sizes = [8, 128], strides = [1, 1]} : vector<8x512xf32> to vector<8x128xf32>
    %13 = arith.negf %12 : vector<8x128xf32>
    %14 = math.exp %13 : vector<8x128xf32>
    %cst_9 = arith.constant 1.000000e+00 : f32
    %15 = vector.broadcast %cst_9 : f32 to vector<8x128xf32>
    %16 = arith.addf %15, %14 : vector<8x128xf32>
    %17 = arith.divf %15, %16 : vector<8x128xf32>
    %18 = vector.extract_strided_slice %11 {offsets = [0, 128], sizes = [8, 128], strides = [1, 1]} : vector<8x512xf32> to vector<8x128xf32>
    %19 = arith.negf %18 : vector<8x128xf32>
    %20 = math.exp %19 : vector<8x128xf32>
    %cst_10 = arith.constant 1.000000e+00 : f32
    %21 = vector.broadcast %cst_10 : f32 to vector<8x128xf32>
    %22 = arith.addf %21, %20 : vector<8x128xf32>
    %23 = arith.divf %21, %22 : vector<8x128xf32>
    %24 = vector.extract_strided_slice %11 {offsets = [0, 256], sizes = [8, 128], strides = [1, 1]} : vector<8x512xf32> to vector<8x128xf32>
    %25 = math.tanh %24 : vector<8x128xf32>
    %26 = vector.extract_strided_slice %11 {offsets = [0, 384], sizes = [8, 128], strides = [1, 1]} : vector<8x512xf32> to vector<8x128xf32>
    %27 = arith.negf %26 : vector<8x128xf32>
    %28 = math.exp %27 : vector<8x128xf32>
    %cst_11 = arith.constant 1.000000e+00 : f32
    %29 = vector.broadcast %cst_11 : f32 to vector<8x128xf32>
    %30 = arith.addf %29, %28 : vector<8x128xf32>
    %31 = arith.divf %29, %30 : vector<8x128xf32>
    %32 = arith.mulf %23, %4 : vector<8x128xf32>
    %33 = arith.mulf %17, %25 : vector<8x128xf32>
    %34 = arith.addf %32, %33 : vector<8x128xf32>
    %35 = math.tanh %34 : vector<8x128xf32>
    %36 = arith.mulf %31, %35 : vector<8x128xf32>
    %c0_12 = arith.constant 0 : index
    %c0_13 = arith.constant 0 : index
    %37 = vector.load %arg6[%c0_12, %c0_13] : memref<8x128xf32, #tpu.memory_space<vmem>>, vector<8x128xf32>
    tpu.vector_store %arg6[%c0_12, %c0_13], %34 {strides = array<i32>} : memref<8x128xf32, #tpu.memory_space<vmem>>, vector<8x128xf32>,
    %c0_14 = arith.constant 0 : index
    %c0_15 = arith.constant 0 : index
    %38 = vector.load %arg5[%c0_14, %c0_15] : memref<8x128xf32, #tpu.memory_space<vmem>>, vector<8x128xf32>
    tpu.vector_store %arg5[%c0_14, %c0_15], %36 {strides = array<i32>} : memref<8x128xf32, #tpu.memory_space<vmem>>, vector<8x128xf32>,
    %39 = arith.truncf %36 : vector<8x128xf32> to vector<8x128xbf16>
    %40 = arith.index_cast %c0_i32_1 : i32 to index
    %c0_16 = arith.constant 0 : index
    %c0_17 = arith.constant 0 : index
    %41 = vector.load %arg4[%40, %c0_16, %c0_17] : memref<8x8x128xbf16, #tpu.memory_space<vmem>>, vector<1x8x128xbf16>
    %42 = vector.shape_cast %41 : vector<1x8x128xbf16> to vector<8x128xbf16>
    %43 = vector.shape_cast %39 : vector<8x128xbf16> to vector<1x8x128xbf16>
    tpu.vector_store %arg4[%40, %c0_16, %c0_17], %43 {strides = array<i32>} : memref<8x8x128xbf16, #tpu.memory_space<vmem>>, vector<1x8x128xbf16>,
    %c1_i32 = arith.constant 1 : i32
    %c0_18 = arith.constant 0 : index
    %c0_19 = arith.constant 0 : index
    %44 = vector.load %arg5[%c0_18, %c0_19] : memref<8x128xf32, #tpu.memory_space<vmem>>, vector<8x128xf32>
    %c0_20 = arith.constant 0 : index
    %c0_21 = arith.constant 0 : index
    %45 = vector.load %arg6[%c0_20, %c0_21] : memref<8x128xf32, #tpu.memory_space<vmem>>, vector<8x128xf32>
    %46 = arith.index_cast %c1_i32 : i32 to index
    %c0_22 = arith.constant 0 : index
    %c0_23 = arith.constant 0 : index
    %47 = vector.load %arg2[%46, %c0_22, %c0_23] : memref<8x8x512xf32, #tpu.memory_space<vmem>>, vector<1x8x512xf32>
    %48 = vector.shape_cast %47 : vector<1x8x512xf32> to vector<8x512xf32>
    %49 = arith.truncf %44 : vector<8x128xf32> to vector<8x128xbf16>
    %c0_24 = arith.constant 0 : index
    %c0_25 = arith.constant 0 : index
    %50 = vector.load %arg3[%c0_24, %c0_25] : memref<128x512xbf16, #tpu.memory_space<vmem>>, vector<128x512xbf16>
    %cst_26 = arith.constant dense<0.000000e+00> : vector<8x512xf32>
    %51 = tpu.matmul %49, %50, %cst_26 {dimension_numbers = #tpu.dot_dimension_numbers<[1], [0], [0], [1], [0, 0, 1, 1], [], []>} : vector<8x128xbf16>, vector<128x512xbf16>, vector<8x512xf32> -> vector<8x512xf32>
    %52 = arith.addf %48, %51 : vector<8x512xf32>
    %53 = vector.extract_strided_slice %52 {offsets = [0, 0], sizes = [8, 128], strides = [1, 1]} : vector<8x512xf32> to vector<8x128xf32>
    %54 = arith.negf %53 : vector<8x128xf32>
    %55 = math.exp %54 : vector<8x128xf32>
    %cst_27 = arith.constant 1.000000e+00 : f32
    %56 = vector.broadcast %cst_27 : f32 to vector<8x128xf32>
    %57 = arith.addf %56, %55 : vector<8x128xf32>
    %58 = arith.divf %56, %57 : vector<8x128xf32>
    %59 = vector.extract_strided_slice %52 {offsets = [0, 128], sizes = [8, 128], strides = [1, 1]} : vector<8x512xf32> to vector<8x128xf32>
    %60 = arith.negf %59 : vector<8x128xf32>
    %61 = math.exp %60 : vector<8x128xf32>
    %cst_28 = arith.constant 1.000000e+00 : f32
    %62 = vector.broadcast %cst_28 : f32 to vector<8x128xf32>
    %63 = arith.addf %62, %61 : vector<8x128xf32>
    %64 = arith.divf %62, %63 : vector<8x128xf32>
    %65 = vector.extract_strided_slice %52 {offsets = [0, 256], sizes = [8, 128], strides = [1, 1]} : vector<8x512xf32> to vector<8x128xf32>
    %66 = math.tanh %65 : vector<8x128xf32>
    %67 = vector.extract_strided_slice %52 {offsets = [0, 384], sizes = [8, 128], strides = [1, 1]} : vector<8x512xf32> to vector<8x128xf32>
    %68 = arith.negf %67 : vector<8x128xf32>
    %69 = math.exp %68 : vector<8x128xf32>
    %cst_29 = arith.constant 1.000000e+00 : f32
    %70 = vector.broadcast %cst_29 : f32 to vector<8x128xf32>
    %71 = arith.addf %70, %69 : vector<8x128xf32>
    %72 = arith.divf %70, %71 : vector<8x128xf32>
    %73 = arith.mulf %64, %45 : vector<8x128xf32>
    %74 = arith.mulf %58, %66 : vector<8x128xf32>
    %75 = arith.addf %73, %74 : vector<8x128xf32>
    %76 = math.tanh %75 : vector<8x128xf32>
    %77 = arith.mulf %72, %76 : vector<8x128xf32>
    %c0_30 = arith.constant 0 : index
    %c0_31 = arith.constant 0 : index
    %78 = vector.load %arg6[%c0_30, %c0_31] : memref<8x128xf32, #tpu.memory_space<vmem>>, vector<8x128xf32>
    tpu.vector_store %arg6[%c0_30, %c0_31], %75 {strides = array<i32>} : memref<8x128xf32, #tpu.memory_space<vmem>>, vector<8x128xf32>,
    %c0_32 = arith.constant 0 : index
    %c0_33 = arith.constant 0 : index
    %79 = vector.load %arg5[%c0_32, %c0_33] : memref<8x128xf32, #tpu.memory_space<vmem>>, vector<8x128xf32>
    tpu.vector_store %arg5[%c0_32, %c0_33], %77 {strides = array<i32>} : memref<8x128xf32, #tpu.memory_space<vmem>>, vector<8x128xf32>,
    %80 = arith.truncf %77 : vector<8x128xf32> to vector<8x128xbf16>
    %81 = arith.index_cast %c1_i32 : i32 to index
    %c0_34 = arith.constant 0 : index
    %c0_35 = arith.constant 0 : index
    %82 = vector.load %arg4[%81, %c0_34, %c0_35] : memref<8x8x128xbf16, #tpu.memory_space<vmem>>, vector<1x8x128xbf16>
    %83 = vector.shape_cast %82 : vector<1x8x128xbf16> to vector<8x128xbf16>
    %84 = vector.shape_cast %80 : vector<8x128xbf16> to vector<1x8x128xbf16>
    tpu.vector_store %arg4[%81, %c0_34, %c0_35], %84 {strides = array<i32>} : memref<8x8x128xbf16, #tpu.memory_space<vmem>>, vector<1x8x128xbf16>,
    %c2_i32 = arith.constant 2 : i32
    %c0_36 = arith.constant 0 : index
    %c0_37 = arith.constant 0 : index
    %85 = vector.load %arg5[%c0_36, %c0_37] : memref<8x128xf32, #tpu.memory_space<vmem>>, vector<8x128xf32>
    %c0_38 = arith.constant 0 : index
    %c0_39 = arith.constant 0 : index
    %86 = vector.load %arg6[%c0_38, %c0_39] : memref<8x128xf32, #tpu.memory_space<vmem>>, vector<8x128xf32>
    %87 = arith.index_cast %c2_i32 : i32 to index
    %c0_40 = arith.constant 0 : index
    %c0_41 = arith.constant 0 : index
    %88 = vector.load %arg2[%87, %c0_40, %c0_41] : memref<8x8x512xf32, #tpu.memory_space<vmem>>, vector<1x8x512xf32>
    %89 = vector.shape_cast %88 : vector<1x8x512xf32> to vector<8x512xf32>
    %90 = arith.truncf %85 : vector<8x128xf32> to vector<8x128xbf16>
    %c0_42 = arith.constant 0 : index
    %c0_43 = arith.constant 0 : index
    %91 = vector.load %arg3[%c0_42, %c0_43] : memref<128x512xbf16, #tpu.memory_space<vmem>>, vector<128x512xbf16>
    %cst_44 = arith.constant dense<0.000000e+00> : vector<8x512xf32>
    %92 = tpu.matmul %90, %91, %cst_44 {dimension_numbers = #tpu.dot_dimension_numbers<[1], [0], [0], [1], [0, 0, 1, 1], [], []>} : vector<8x128xbf16>, vector<128x512xbf16>, vector<8x512xf32> -> vector<8x512xf32>
    %93 = arith.addf %89, %92 : vector<8x512xf32>
    %94 = vector.extract_strided_slice %93 {offsets = [0, 0], sizes = [8, 128], strides = [1, 1]} : vector<8x512xf32> to vector<8x128xf32>
    %95 = arith.negf %94 : vector<8x128xf32>
    %96 = math.exp %95 : vector<8x128xf32>
    %cst_45 = arith.constant 1.000000e+00 : f32
    %97 = vector.broadcast %cst_45 : f32 to vector<8x128xf32>
    %98 = arith.addf %97, %96 : vector<8x128xf32>
    %99 = arith.divf %97, %98 : vector<8x128xf32>
    %100 = vector.extract_strided_slice %93 {offsets = [0, 128], sizes = [8, 128], strides = [1, 1]} : vector<8x512xf32> to vector<8x128xf32>
    %101 = arith.negf %100 : vector<8x128xf32>
    %102 = math.exp %101 : vector<8x128xf32>
    %cst_46 = arith.constant 1.000000e+00 : f32
    %103 = vector.broadcast %cst_46 : f32 to vector<8x128xf32>
    %104 = arith.addf %103, %102 : vector<8x128xf32>
    %105 = arith.divf %103, %104 : vector<8x128xf32>
    %106 = vector.extract_strided_slice %93 {offsets = [0, 256], sizes = [8, 128], strides = [1, 1]} : vector<8x512xf32> to vector<8x128xf32>
    %107 = math.tanh %106 : vector<8x128xf32>
    %108 = vector.extract_strided_slice %93 {offsets = [0, 384], sizes = [8, 128], strides = [1, 1]} : vector<8x512xf32> to vector<8x128xf32>
    %109 = arith.negf %108 : vector<8x128xf32>
    %110 = math.exp %109 : vector<8x128xf32>
    %cst_47 = arith.constant 1.000000e+00 : f32
    %111 = vector.broadcast %cst_47 : f32 to vector<8x128xf32>
    %112 = arith.addf %111, %110 : vector<8x128xf32>
    %113 = arith.divf %111, %112 : vector<8x128xf32>
    %114 = arith.mulf %105, %86 : vector<8x128xf32>
    %115 = arith.mulf %99, %107 : vector<8x128xf32>
    %116 = arith.addf %114, %115 : vector<8x128xf32>
    %117 = math.tanh %116 : vector<8x128xf32>
    %118 = arith.mulf %113, %117 : vector<8x128xf32>
    %c0_48 = arith.constant 0 : index
    %c0_49 = arith.constant 0 : index
    %119 = vector.load %arg6[%c0_48, %c0_49] : memref<8x128xf32, #tpu.memory_space<vmem>>, vector<8x128xf32>
    tpu.vector_store %arg6[%c0_48, %c0_49], %116 {strides = array<i32>} : memref<8x128xf32, #tpu.memory_space<vmem>>, vector<8x128xf32>,
    %c0_50 = arith.constant 0 : index
    %c0_51 = arith.constant 0 : index
    %120 = vector.load %arg5[%c0_50, %c0_51] : memref<8x128xf32, #tpu.memory_space<vmem>>, vector<8x128xf32>
    tpu.vector_store %arg5[%c0_50, %c0_51], %118 {strides = array<i32>} : memref<8x128xf32, #tpu.memory_space<vmem>>, vector<8x128xf32>,
    %121 = arith.truncf %118 : vector<8x128xf32> to vector<8x128xbf16>
    %122 = arith.index_cast %c2_i32 : i32 to index
    %c0_52 = arith.constant 0 : index
    %c0_53 = arith.constant 0 : index
    %123 = vector.load %arg4[%122, %c0_52, %c0_53] : memref<8x8x128xbf16, #tpu.memory_space<vmem>>, vector<1x8x128xbf16>
    %124 = vector.shape_cast %123 : vector<1x8x128xbf16> to vector<8x128xbf16>
    %125 = vector.shape_cast %121 : vector<8x128xbf16> to vector<1x8x128xbf16>
    tpu.vector_store %arg4[%122, %c0_52, %c0_53], %125 {strides = array<i32>} : memref<8x8x128xbf16, #tpu.memory_space<vmem>>, vector<1x8x128xbf16>,
    %c3_i32 = arith.constant 3 : i32
    %c0_54 = arith.constant 0 : index
    %c0_55 = arith.constant 0 : index
    %126 = vector.load %arg5[%c0_54, %c0_55] : memref<8x128xf32, #tpu.memory_space<vmem>>, vector<8x128xf32>
    %c0_56 = arith.constant 0 : index
    %c0_57 = arith.constant 0 : index
    %127 = vector.load %arg6[%c0_56, %c0_57] : memref<8x128xf32, #tpu.memory_space<vmem>>, vector<8x128xf32>
    %128 = arith.index_cast %c3_i32 : i32 to index
    %c0_58 = arith.constant 0 : index
    %c0_59 = arith.constant 0 : index
    %129 = vector.load %arg2[%128, %c0_58, %c0_59] : memref<8x8x512xf32, #tpu.memory_space<vmem>>, vector<1x8x512xf32>
    %130 = vector.shape_cast %129 : vector<1x8x512xf32> to vector<8x512xf32>
    %131 = arith.truncf %126 : vector<8x128xf32> to vector<8x128xbf16>
    %c0_60 = arith.constant 0 : index
    %c0_61 = arith.constant 0 : index
    %132 = vector.load %arg3[%c0_60, %c0_61] : memref<128x512xbf16, #tpu.memory_space<vmem>>, vector<128x512xbf16>
    %cst_62 = arith.constant dense<0.000000e+00> : vector<8x512xf32>
    %133 = tpu.matmul %131, %132, %cst_62 {dimension_numbers = #tpu.dot_dimension_numbers<[1], [0], [0], [1], [0, 0, 1, 1], [], []>} : vector<8x128xbf16>, vector<128x512xbf16>, vector<8x512xf32> -> vector<8x512xf32>
    %134 = arith.addf %130, %133 : vector<8x512xf32>
    %135 = vector.extract_strided_slice %134 {offsets = [0, 0], sizes = [8, 128], strides = [1, 1]} : vector<8x512xf32> to vector<8x128xf32>
    %136 = arith.negf %135 : vector<8x128xf32>
    %137 = math.exp %136 : vector<8x128xf32>
    %cst_63 = arith.constant 1.000000e+00 : f32
    %138 = vector.broadcast %cst_63 : f32 to vector<8x128xf32>
    %139 = arith.addf %138, %137 : vector<8x128xf32>
    %140 = arith.divf %138, %139 : vector<8x128xf32>
    %141 = vector.extract_strided_slice %134 {offsets = [0, 128], sizes = [8, 128], strides = [1, 1]} : vector<8x512xf32> to vector<8x128xf32>
    %142 = arith.negf %141 : vector<8x128xf32>
    %143 = math.exp %142 : vector<8x128xf32>
    %cst_64 = arith.constant 1.000000e+00 : f32
    %144 = vector.broadcast %cst_64 : f32 to vector<8x128xf32>
    %145 = arith.addf %144, %143 : vector<8x128xf32>
    %146 = arith.divf %144, %145 : vector<8x128xf32>
    %147 = vector.extract_strided_slice %134 {offsets = [0, 256], sizes = [8, 128], strides = [1, 1]} : vector<8x512xf32> to vector<8x128xf32>
    %148 = math.tanh %147 : vector<8x128xf32>
    %149 = vector.extract_strided_slice %134 {offsets = [0, 384], sizes = [8, 128], strides = [1, 1]} : vector<8x512xf32> to vector<8x128xf32>
    %150 = arith.negf %149 : vector<8x128xf32>
    %151 = math.exp %150 : vector<8x128xf32>
    %cst_65 = arith.constant 1.000000e+00 : f32
    %152 = vector.broadcast %cst_65 : f32 to vector<8x128xf32>
    %153 = arith.addf %152, %151 : vector<8x128xf32>
    %154 = arith.divf %152, %153 : vector<8x128xf32>
    %155 = arith.mulf %146, %127 : vector<8x128xf32>
    %156 = arith.mulf %140, %148 : vector<8x128xf32>
    %157 = arith.addf %155, %156 : vector<8x128xf32>
    %158 = math.tanh %157 : vector<8x128xf32>
    %159 = arith.mulf %154, %158 : vector<8x128xf32>
    %c0_66 = arith.constant 0 : index
    %c0_67 = arith.constant 0 : index
    %160 = vector.load %arg6[%c0_66, %c0_67] : memref<8x128xf32, #tpu.memory_space<vmem>>, vector<8x128xf32>
    tpu.vector_store %arg6[%c0_66, %c0_67], %157 {strides = array<i32>} : memref<8x128xf32, #tpu.memory_space<vmem>>, vector<8x128xf32>,
    %c0_68 = arith.constant 0 : index
    %c0_69 = arith.constant 0 : index
    %161 = vector.load %arg5[%c0_68, %c0_69] : memref<8x128xf32, #tpu.memory_space<vmem>>, vector<8x128xf32>
    tpu.vector_store %arg5[%c0_68, %c0_69], %159 {strides = array<i32>} : memref<8x128xf32, #tpu.memory_space<vmem>>, vector<8x128xf32>,
    %162 = arith.truncf %159 : vector<8x128xf32> to vector<8x128xbf16>
    %163 = arith.index_cast %c3_i32 : i32 to index
    %c0_70 = arith.constant 0 : index
    %c0_71 = arith.constant 0 : index
    %164 = vector.load %arg4[%163, %c0_70, %c0_71] : memref<8x8x128xbf16, #tpu.memory_space<vmem>>, vector<1x8x128xbf16>
    %165 = vector.shape_cast %164 : vector<1x8x128xbf16> to vector<8x128xbf16>
    %166 = vector.shape_cast %162 : vector<8x128xbf16> to vector<1x8x128xbf16>
    tpu.vector_store %arg4[%163, %c0_70, %c0_71], %166 {strides = array<i32>} : memref<8x8x128xbf16, #tpu.memory_space<vmem>>, vector<1x8x128xbf16>,
    %c4_i32 = arith.constant 4 : i32
    %c0_72 = arith.constant 0 : index
    %c0_73 = arith.constant 0 : index
    %167 = vector.load %arg5[%c0_72, %c0_73] : memref<8x128xf32, #tpu.memory_space<vmem>>, vector<8x128xf32>
    %c0_74 = arith.constant 0 : index
    %c0_75 = arith.constant 0 : index
    %168 = vector.load %arg6[%c0_74, %c0_75] : memref<8x128xf32, #tpu.memory_space<vmem>>, vector<8x128xf32>
    %169 = arith.index_cast %c4_i32 : i32 to index
    %c0_76 = arith.constant 0 : index
    %c0_77 = arith.constant 0 : index
    %170 = vector.load %arg2[%169, %c0_76, %c0_77] : memref<8x8x512xf32, #tpu.memory_space<vmem>>, vector<1x8x512xf32>
    %171 = vector.shape_cast %170 : vector<1x8x512xf32> to vector<8x512xf32>
    %172 = arith.truncf %167 : vector<8x128xf32> to vector<8x128xbf16>
    %c0_78 = arith.constant 0 : index
    %c0_79 = arith.constant 0 : index
    %173 = vector.load %arg3[%c0_78, %c0_79] : memref<128x512xbf16, #tpu.memory_space<vmem>>, vector<128x512xbf16>
    %cst_80 = arith.constant dense<0.000000e+00> : vector<8x512xf32>
    %174 = tpu.matmul %172, %173, %cst_80 {dimension_numbers = #tpu.dot_dimension_numbers<[1], [0], [0], [1], [0, 0, 1, 1], [], []>} : vector<8x128xbf16>, vector<128x512xbf16>, vector<8x512xf32> -> vector<8x512xf32>
    %175 = arith.addf %171, %174 : vector<8x512xf32>
    %176 = vector.extract_strided_slice %175 {offsets = [0, 0], sizes = [8, 128], strides = [1, 1]} : vector<8x512xf32> to vector<8x128xf32>
    %177 = arith.negf %176 : vector<8x128xf32>
    %178 = math.exp %177 : vector<8x128xf32>
    %cst_81 = arith.constant 1.000000e+00 : f32
    %179 = vector.broadcast %cst_81 : f32 to vector<8x128xf32>
    %180 = arith.addf %179, %178 : vector<8x128xf32>
    %181 = arith.divf %179, %180 : vector<8x128xf32>
    %182 = vector.extract_strided_slice %175 {offsets = [0, 128], sizes = [8, 128], strides = [1, 1]} : vector<8x512xf32> to vector<8x128xf32>
    %183 = arith.negf %182 : vector<8x128xf32>
    %184 = math.exp %183 : vector<8x128xf32>
    %cst_82 = arith.constant 1.000000e+00 : f32
    %185 = vector.broadcast %cst_82 : f32 to vector<8x128xf32>
    %186 = arith.addf %185, %184 : vector<8x128xf32>
    %187 = arith.divf %185, %186 : vector<8x128xf32>
    %188 = vector.extract_strided_slice %175 {offsets = [0, 256], sizes = [8, 128], strides = [1, 1]} : vector<8x512xf32> to vector<8x128xf32>
    %189 = math.tanh %188 : vector<8x128xf32>
    %190 = vector.extract_strided_slice %175 {offsets = [0, 384], sizes = [8, 128], strides = [1, 1]} : vector<8x512xf32> to vector<8x128xf32>
    %191 = arith.negf %190 : vector<8x128xf32>
    %192 = math.exp %191 : vector<8x128xf32>
    %cst_83 = arith.constant 1.000000e+00 : f32
    %193 = vector.broadcast %cst_83 : f32 to vector<8x128xf32>
    %194 = arith.addf %193, %192 : vector<8x128xf32>
    %195 = arith.divf %193, %194 : vector<8x128xf32>
    %196 = arith.mulf %187, %168 : vector<8x128xf32>
    %197 = arith.mulf %181, %189 : vector<8x128xf32>
    %198 = arith.addf %196, %197 : vector<8x128xf32>
    %199 = math.tanh %198 : vector<8x128xf32>
    %200 = arith.mulf %195, %199 : vector<8x128xf32>
    %c0_84 = arith.constant 0 : index
    %c0_85 = arith.constant 0 : index
    %201 = vector.load %arg6[%c0_84, %c0_85] : memref<8x128xf32, #tpu.memory_space<vmem>>, vector<8x128xf32>
    tpu.vector_store %arg6[%c0_84, %c0_85], %198 {strides = array<i32>} : memref<8x128xf32, #tpu.memory_space<vmem>>, vector<8x128xf32>,
    %c0_86 = arith.constant 0 : index
    %c0_87 = arith.constant 0 : index
    %202 = vector.load %arg5[%c0_86, %c0_87] : memref<8x128xf32, #tpu.memory_space<vmem>>, vector<8x128xf32>
    tpu.vector_store %arg5[%c0_86, %c0_87], %200 {strides = array<i32>} : memref<8x128xf32, #tpu.memory_space<vmem>>, vector<8x128xf32>,
    %203 = arith.truncf %200 : vector<8x128xf32> to vector<8x128xbf16>
    %204 = arith.index_cast %c4_i32 : i32 to index
    %c0_88 = arith.constant 0 : index
    %c0_89 = arith.constant 0 : index
    %205 = vector.load %arg4[%204, %c0_88, %c0_89] : memref<8x8x128xbf16, #tpu.memory_space<vmem>>, vector<1x8x128xbf16>
    %206 = vector.shape_cast %205 : vector<1x8x128xbf16> to vector<8x128xbf16>
    %207 = vector.shape_cast %203 : vector<8x128xbf16> to vector<1x8x128xbf16>
    tpu.vector_store %arg4[%204, %c0_88, %c0_89], %207 {strides = array<i32>} : memref<8x8x128xbf16, #tpu.memory_space<vmem>>, vector<1x8x128xbf16>,
    %c5_i32 = arith.constant 5 : i32
    %c0_90 = arith.constant 0 : index
    %c0_91 = arith.constant 0 : index
    %208 = vector.load %arg5[%c0_90, %c0_91] : memref<8x128xf32, #tpu.memory_space<vmem>>, vector<8x128xf32>
    %c0_92 = arith.constant 0 : index
    %c0_93 = arith.constant 0 : index
    %209 = vector.load %arg6[%c0_92, %c0_93] : memref<8x128xf32, #tpu.memory_space<vmem>>, vector<8x128xf32>
    %210 = arith.index_cast %c5_i32 : i32 to index
    %c0_94 = arith.constant 0 : index
    %c0_95 = arith.constant 0 : index
    %211 = vector.load %arg2[%210, %c0_94, %c0_95] : memref<8x8x512xf32, #tpu.memory_space<vmem>>, vector<1x8x512xf32>
    %212 = vector.shape_cast %211 : vector<1x8x512xf32> to vector<8x512xf32>
    %213 = arith.truncf %208 : vector<8x128xf32> to vector<8x128xbf16>
    %c0_96 = arith.constant 0 : index
    %c0_97 = arith.constant 0 : index
    %214 = vector.load %arg3[%c0_96, %c0_97] : memref<128x512xbf16, #tpu.memory_space<vmem>>, vector<128x512xbf16>
    %cst_98 = arith.constant dense<0.000000e+00> : vector<8x512xf32>
    %215 = tpu.matmul %213, %214, %cst_98 {dimension_numbers = #tpu.dot_dimension_numbers<[1], [0], [0], [1], [0, 0, 1, 1], [], []>} : vector<8x128xbf16>, vector<128x512xbf16>, vector<8x512xf32> -> vector<8x512xf32>
    %216 = arith.addf %212, %215 : vector<8x512xf32>
    %217 = vector.extract_strided_slice %216 {offsets = [0, 0], sizes = [8, 128], strides = [1, 1]} : vector<8x512xf32> to vector<8x128xf32>
    %218 = arith.negf %217 : vector<8x128xf32>
    %219 = math.exp %218 : vector<8x128xf32>
    %cst_99 = arith.constant 1.000000e+00 : f32
    %220 = vector.broadcast %cst_99 : f32 to vector<8x128xf32>
    %221 = arith.addf %220, %219 : vector<8x128xf32>
    %222 = arith.divf %220, %221 : vector<8x128xf32>
    %223 = vector.extract_strided_slice %216 {offsets = [0, 128], sizes = [8, 128], strides = [1, 1]} : vector<8x512xf32> to vector<8x128xf32>
    %224 = arith.negf %223 : vector<8x128xf32>
    %225 = math.exp %224 : vector<8x128xf32>
    %cst_100 = arith.constant 1.000000e+00 : f32
    %226 = vector.broadcast %cst_100 : f32 to vector<8x128xf32>
    %227 = arith.addf %226, %225 : vector<8x128xf32>
    %228 = arith.divf %226, %227 : vector<8x128xf32>
    %229 = vector.extract_strided_slice %216 {offsets = [0, 256], sizes = [8, 128], strides = [1, 1]} : vector<8x512xf32> to vector<8x128xf32>
    %230 = math.tanh %229 : vector<8x128xf32>
    %231 = vector.extract_strided_slice %216 {offsets = [0, 384], sizes = [8, 128], strides = [1, 1]} : vector<8x512xf32> to vector<8x128xf32>
    %232 = arith.negf %231 : vector<8x128xf32>
    %233 = math.exp %232 : vector<8x128xf32>
    %cst_101 = arith.constant 1.000000e+00 : f32
    %234 = vector.broadcast %cst_101 : f32 to vector<8x128xf32>
    %235 = arith.addf %234, %233 : vector<8x128xf32>
    %236 = arith.divf %234, %235 : vector<8x128xf32>
    %237 = arith.mulf %228, %209 : vector<8x128xf32>
    %238 = arith.mulf %222, %230 : vector<8x128xf32>
    %239 = arith.addf %237, %238 : vector<8x128xf32>
    %240 = math.tanh %239 : vector<8x128xf32>
    %241 = arith.mulf %236, %240 : vector<8x128xf32>
    %c0_102 = arith.constant 0 : index
    %c0_103 = arith.constant 0 : index
    %242 = vector.load %arg6[%c0_102, %c0_103] : memref<8x128xf32, #tpu.memory_space<vmem>>, vector<8x128xf32>
    tpu.vector_store %arg6[%c0_102, %c0_103], %239 {strides = array<i32>} : memref<8x128xf32, #tpu.memory_space<vmem>>, vector<8x128xf32>,
    %c0_104 = arith.constant 0 : index
    %c0_105 = arith.constant 0 : index
    %243 = vector.load %arg5[%c0_104, %c0_105] : memref<8x128xf32, #tpu.memory_space<vmem>>, vector<8x128xf32>
    tpu.vector_store %arg5[%c0_104, %c0_105], %241 {strides = array<i32>} : memref<8x128xf32, #tpu.memory_space<vmem>>, vector<8x128xf32>,
    %244 = arith.truncf %241 : vector<8x128xf32> to vector<8x128xbf16>
    %245 = arith.index_cast %c5_i32 : i32 to index
    %c0_106 = arith.constant 0 : index
    %c0_107 = arith.constant 0 : index
    %246 = vector.load %arg4[%245, %c0_106, %c0_107] : memref<8x8x128xbf16, #tpu.memory_space<vmem>>, vector<1x8x128xbf16>
    %247 = vector.shape_cast %246 : vector<1x8x128xbf16> to vector<8x128xbf16>
    %248 = vector.shape_cast %244 : vector<8x128xbf16> to vector<1x8x128xbf16>
    tpu.vector_store %arg4[%245, %c0_106, %c0_107], %248 {strides = array<i32>} : memref<8x8x128xbf16, #tpu.memory_space<vmem>>, vector<1x8x128xbf16>,
    %c6_i32 = arith.constant 6 : i32
    %c0_108 = arith.constant 0 : index
    %c0_109 = arith.constant 0 : index
    %249 = vector.load %arg5[%c0_108, %c0_109] : memref<8x128xf32, #tpu.memory_space<vmem>>, vector<8x128xf32>
    %c0_110 = arith.constant 0 : index
    %c0_111 = arith.constant 0 : index
    %250 = vector.load %arg6[%c0_110, %c0_111] : memref<8x128xf32, #tpu.memory_space<vmem>>, vector<8x128xf32>
    %251 = arith.index_cast %c6_i32 : i32 to index
    %c0_112 = arith.constant 0 : index
    %c0_113 = arith.constant 0 : index
    %252 = vector.load %arg2[%251, %c0_112, %c0_113] : memref<8x8x512xf32, #tpu.memory_space<vmem>>, vector<1x8x512xf32>
    %253 = vector.shape_cast %252 : vector<1x8x512xf32> to vector<8x512xf32>
    %254 = arith.truncf %249 : vector<8x128xf32> to vector<8x128xbf16>
    %c0_114 = arith.constant 0 : index
    %c0_115 = arith.constant 0 : index
    %255 = vector.load %arg3[%c0_114, %c0_115] : memref<128x512xbf16, #tpu.memory_space<vmem>>, vector<128x512xbf16>
    %cst_116 = arith.constant dense<0.000000e+00> : vector<8x512xf32>
    %256 = tpu.matmul %254, %255, %cst_116 {dimension_numbers = #tpu.dot_dimension_numbers<[1], [0], [0], [1], [0, 0, 1, 1], [], []>} : vector<8x128xbf16>, vector<128x512xbf16>, vector<8x512xf32> -> vector<8x512xf32>
    %257 = arith.addf %253, %256 : vector<8x512xf32>
    %258 = vector.extract_strided_slice %257 {offsets = [0, 0], sizes = [8, 128], strides = [1, 1]} : vector<8x512xf32> to vector<8x128xf32>
    %259 = arith.negf %258 : vector<8x128xf32>
    %260 = math.exp %259 : vector<8x128xf32>
    %cst_117 = arith.constant 1.000000e+00 : f32
    %261 = vector.broadcast %cst_117 : f32 to vector<8x128xf32>
    %262 = arith.addf %261, %260 : vector<8x128xf32>
    %263 = arith.divf %261, %262 : vector<8x128xf32>
    %264 = vector.extract_strided_slice %257 {offsets = [0, 128], sizes = [8, 128], strides = [1, 1]} : vector<8x512xf32> to vector<8x128xf32>
    %265 = arith.negf %264 : vector<8x128xf32>
    %266 = math.exp %265 : vector<8x128xf32>
    %cst_118 = arith.constant 1.000000e+00 : f32
    %267 = vector.broadcast %cst_118 : f32 to vector<8x128xf32>
    %268 = arith.addf %267, %266 : vector<8x128xf32>
    %269 = arith.divf %267, %268 : vector<8x128xf32>
    %270 = vector.extract_strided_slice %257 {offsets = [0, 256], sizes = [8, 128], strides = [1, 1]} : vector<8x512xf32> to vector<8x128xf32>
    %271 = math.tanh %270 : vector<8x128xf32>
    %272 = vector.extract_strided_slice %257 {offsets = [0, 384], sizes = [8, 128], strides = [1, 1]} : vector<8x512xf32> to vector<8x128xf32>
    %273 = arith.negf %272 : vector<8x128xf32>
    %274 = math.exp %273 : vector<8x128xf32>
    %cst_119 = arith.constant 1.000000e+00 : f32
    %275 = vector.broadcast %cst_119 : f32 to vector<8x128xf32>
    %276 = arith.addf %275, %274 : vector<8x128xf32>
    %277 = arith.divf %275, %276 : vector<8x128xf32>
    %278 = arith.mulf %269, %250 : vector<8x128xf32>
    %279 = arith.mulf %263, %271 : vector<8x128xf32>
    %280 = arith.addf %278, %279 : vector<8x128xf32>
    %281 = math.tanh %280 : vector<8x128xf32>
    %282 = arith.mulf %277, %281 : vector<8x128xf32>
    %c0_120 = arith.constant 0 : index
    %c0_121 = arith.constant 0 : index
    %283 = vector.load %arg6[%c0_120, %c0_121] : memref<8x128xf32, #tpu.memory_space<vmem>>, vector<8x128xf32>
    tpu.vector_store %arg6[%c0_120, %c0_121], %280 {strides = array<i32>} : memref<8x128xf32, #tpu.memory_space<vmem>>, vector<8x128xf32>,
    %c0_122 = arith.constant 0 : index
    %c0_123 = arith.constant 0 : index
    %284 = vector.load %arg5[%c0_122, %c0_123] : memref<8x128xf32, #tpu.memory_space<vmem>>, vector<8x128xf32>
    tpu.vector_store %arg5[%c0_122, %c0_123], %282 {strides = array<i32>} : memref<8x128xf32, #tpu.memory_space<vmem>>, vector<8x128xf32>,
    %285 = arith.truncf %282 : vector<8x128xf32> to vector<8x128xbf16>
    %286 = arith.index_cast %c6_i32 : i32 to index
    %c0_124 = arith.constant 0 : index
    %c0_125 = arith.constant 0 : index
    %287 = vector.load %arg4[%286, %c0_124, %c0_125] : memref<8x8x128xbf16, #tpu.memory_space<vmem>>, vector<1x8x128xbf16>
    %288 = vector.shape_cast %287 : vector<1x8x128xbf16> to vector<8x128xbf16>
    %289 = vector.shape_cast %285 : vector<8x128xbf16> to vector<1x8x128xbf16>
    tpu.vector_store %arg4[%286, %c0_124, %c0_125], %289 {strides = array<i32>} : memref<8x8x128xbf16, #tpu.memory_space<vmem>>, vector<1x8x128xbf16>,
    %c7_i32 = arith.constant 7 : i32
    %c0_126 = arith.constant 0 : index
    %c0_127 = arith.constant 0 : index
    %290 = vector.load %arg5[%c0_126, %c0_127] : memref<8x128xf32, #tpu.memory_space<vmem>>, vector<8x128xf32>
    %c0_128 = arith.constant 0 : index
    %c0_129 = arith.constant 0 : index
    %291 = vector.load %arg6[%c0_128, %c0_129] : memref<8x128xf32, #tpu.memory_space<vmem>>, vector<8x128xf32>
    %292 = arith.index_cast %c7_i32 : i32 to index
    %c0_130 = arith.constant 0 : index
    %c0_131 = arith.constant 0 : index
    %293 = vector.load %arg2[%292, %c0_130, %c0_131] : memref<8x8x512xf32, #tpu.memory_space<vmem>>, vector<1x8x512xf32>
    %294 = vector.shape_cast %293 : vector<1x8x512xf32> to vector<8x512xf32>
    %295 = arith.truncf %290 : vector<8x128xf32> to vector<8x128xbf16>
    %c0_132 = arith.constant 0 : index
    %c0_133 = arith.constant 0 : index
    %296 = vector.load %arg3[%c0_132, %c0_133] : memref<128x512xbf16, #tpu.memory_space<vmem>>, vector<128x512xbf16>
    %cst_134 = arith.constant dense<0.000000e+00> : vector<8x512xf32>
    %297 = tpu.matmul %295, %296, %cst_134 {dimension_numbers = #tpu.dot_dimension_numbers<[1], [0], [0], [1], [0, 0, 1, 1], [], []>} : vector<8x128xbf16>, vector<128x512xbf16>, vector<8x512xf32> -> vector<8x512xf32>
    %298 = arith.addf %294, %297 : vector<8x512xf32>
    %299 = vector.extract_strided_slice %298 {offsets = [0, 0], sizes = [8, 128], strides = [1, 1]} : vector<8x512xf32> to vector<8x128xf32>
    %300 = arith.negf %299 : vector<8x128xf32>
    %301 = math.exp %300 : vector<8x128xf32>
    %cst_135 = arith.constant 1.000000e+00 : f32
    %302 = vector.broadcast %cst_135 : f32 to vector<8x128xf32>
    %303 = arith.addf %302, %301 : vector<8x128xf32>
    %304 = arith.divf %302, %303 : vector<8x128xf32>
    %305 = vector.extract_strided_slice %298 {offsets = [0, 128], sizes = [8, 128], strides = [1, 1]} : vector<8x512xf32> to vector<8x128xf32>
    %306 = arith.negf %305 : vector<8x128xf32>
    %307 = math.exp %306 : vector<8x128xf32>
    %cst_136 = arith.constant 1.000000e+00 : f32
    %308 = vector.broadcast %cst_136 : f32 to vector<8x128xf32>
    %309 = arith.addf %308, %307 : vector<8x128xf32>
    %310 = arith.divf %308, %309 : vector<8x128xf32>
    %311 = vector.extract_strided_slice %298 {offsets = [0, 256], sizes = [8, 128], strides = [1, 1]} : vector<8x512xf32> to vector<8x128xf32>
    %312 = math.tanh %311 : vector<8x128xf32>
    %313 = vector.extract_strided_slice %298 {offsets = [0, 384], sizes = [8, 128], strides = [1, 1]} : vector<8x512xf32> to vector<8x128xf32>
    %314 = arith.negf %313 : vector<8x128xf32>
    %315 = math.exp %314 : vector<8x128xf32>
    %cst_137 = arith.constant 1.000000e+00 : f32
    %316 = vector.broadcast %cst_137 : f32 to vector<8x128xf32>
    %317 = arith.addf %316, %315 : vector<8x128xf32>
    %318 = arith.divf %316, %317 : vector<8x128xf32>
    %319 = arith.mulf %310, %291 : vector<8x128xf32>
    %320 = arith.mulf %304, %312 : vector<8x128xf32>
    %321 = arith.addf %319, %320 : vector<8x128xf32>
    %322 = math.tanh %321 : vector<8x128xf32>
    %323 = arith.mulf %318, %322 : vector<8x128xf32>
    %c0_138 = arith.constant 0 : index
    %c0_139 = arith.constant 0 : index
    %324 = vector.load %arg6[%c0_138, %c0_139] : memref<8x128xf32, #tpu.memory_space<vmem>>, vector<8x128xf32>
    tpu.vector_store %arg6[%c0_138, %c0_139], %321 {strides = array<i32>} : memref<8x128xf32, #tpu.memory_space<vmem>>, vector<8x128xf32>,
    %c0_140 = arith.constant 0 : index
    %c0_141 = arith.constant 0 : index
    %325 = vector.load %arg5[%c0_140, %c0_141] : memref<8x128xf32, #tpu.memory_space<vmem>>, vector<8x128xf32>
    tpu.vector_store %arg5[%c0_140, %c0_141], %323 {strides = array<i32>} : memref<8x128xf32, #tpu.memory_space<vmem>>, vector<8x128xf32>,
    %326 = arith.truncf %323 : vector<8x128xf32> to vector<8x128xbf16>
    %327 = arith.index_cast %c7_i32 : i32 to index
    %c0_142 = arith.constant 0 : index
    %c0_143 = arith.constant 0 : index
    %328 = vector.load %arg4[%327, %c0_142, %c0_143] : memref<8x8x128xbf16, #tpu.memory_space<vmem>>, vector<1x8x128xbf16>
    %329 = vector.shape_cast %328 : vector<1x8x128xbf16> to vector<8x128xbf16>
    %330 = vector.shape_cast %326 : vector<8x128xbf16> to vector<1x8x128xbf16>
    tpu.vector_store %arg4[%327, %c0_142, %c0_143], %330 {strides = array<i32>} : memref<8x8x128xbf16, #tpu.memory_space<vmem>>, vector<1x8x128xbf16>,
    %c8_i32 = arith.constant 8 : i32
    return
  }
  func.func @transform_0(%arg0: i32, %arg1: i32) -> (i32, i32, i32) {
    %c0_i32 = arith.constant 0 : i32
    %c0_i32_0 = arith.constant 0 : i32
    return %arg1, %arg0, %c0_i32 : i32, i32, i32
  }
  func.func @transform_1(%arg0: i32, %arg1: i32) -> (i32, i32) {
    %c0_i32 = arith.constant 0 : i32
    %c0_i32_0 = arith.constant 0 : i32
    %c0_i32_1 = arith.constant 0 : i32
    return %c0_i32, %c0_i32_0 : i32, i32
  }
  func.func @transform_2(%arg0: i32, %arg1: i32) -> (i32, i32, i32) {
    %c0_i32 = arith.constant 0 : i32
    %c0_i32_0 = arith.constant 0 : i32
    return %arg1, %arg0, %c0_i32 : i32, i32, i32
  }
}

</mosaic_0001>

<bundles_post_ra>
// kernel: forward.3
= control target key start
LH: loop header
LB: loop body
LE: loop exit
PB: predicated region body
PF: predicated region fallthrough
CT: control target
= control target key end

     0   :  { %v532_v1 = vmov 0   ;;  %v57_v37 = vlaneseq  ;;  %s808_s1 = inlined_call_operand.vmem [shape: bf16[128,512], index: 1, kind: input, shape index: {}]   ;;  %s809_s0 = inlined_call_operand.vmem [shape: bf16[64,128], index: 0, kind: input, shape index: {}]   ;;  %s810_s2 = inlined_call_operand.vmem [shape: f32[1,512], index: 2, kind: input, shape index: {}]   ;;  %s811_s3 = inlined_call_operand.vmem [shape: f32[64,512], index: 3, kind: output, shape index: {}]  }
   0x1   :  { %v480_v0 = vld [vmem:[%s808_s1 + $0x4] ss:$16 sps:$4 sm:$0xff]   ;;  %293 = vmatprep.mubr.bf16.mxu0 %v532_v1  ;;  %366 = vmatprep.mubr.bf16.mxu1 %v532_v1  ;;  %v482_v2 = vld [vmem:[%s808_s1 + $0xc] ss:$16 sps:$4 sm:$0xff]   ;;  %v484_v3 = vld [vmem:[%s808_s1] ss:$16 sps:$4 sm:$0xff]  }
   0x2   :  { %261 = vmatprep.subr.bf16.mxu0 %v480_v0  ;;  %v485_v4 = vld [vmem:[%s808_s1 + $0x8] ss:$16 sps:$4 sm:$0xff]   ;;  %334 = vmatprep.subr.bf16.mxu1 %v482_v2  ;;  %v486_v5 = vld [vmem:[%s808_s1 + $0x24] ss:$16 sps:$4 sm:$0xff]   ;;  %v488_v6 = vld [vmem:[%s808_s1 + $0x2c] ss:$16 sps:$4 sm:$0xff]  }
   0x3   :  { %262 = vmatpush1.bf16.msra.mxu0 %v484_v3  ;;  %335 = vmatpush1.bf16.msra.mxu1 %v485_v4  ;;  %v490_v7 = vld [vmem:[%s808_s1 + $0x20] ss:$16 sps:$4 sm:$0xff]   ;;  %v491_v8 = vld [vmem:[%s808_s1 + $0x28] ss:$16 sps:$4 sm:$0xff]   ;;  %v492_v9 = vld [vmem:[%s808_s1 + $0x44] ss:$16 sps:$4 sm:$0xff]  }
   0x4   :  { %263 = vmatprep.subr.bf16.mxu0 %v486_v5  ;;  %336 = vmatprep.subr.bf16.mxu1 %v488_v6  ;;  %v494_v10 = vld [vmem:[%s808_s1 + $0x4c] ss:$16 sps:$4 sm:$0xff]   ;;  %v496_v11 = vld [vmem:[%s808_s1 + $0x40] ss:$16 sps:$4 sm:$0xff]   ;;  %v497_v12 = vld [vmem:[%s808_s1 + $0x48] ss:$16 sps:$4 sm:$0xff]  }
   0x5   :  { %v498_v13 = vld [vmem:[%s808_s1 + $0x64] ss:$16 sps:$4 sm:$0xff]   ;;  %v500_v14 = vld [vmem:[%s808_s1 + $0x6c] ss:$16 sps:$4 sm:$0xff]   ;;  %v502_v15 = vld [vmem:[%s808_s1 + $0x60] ss:$16 sps:$4 sm:$0xff]  }
   0x6   :  { %v503_v16 = vld [vmem:[%s808_s1 + $0x68] ss:$16 sps:$4 sm:$0xff]   ;;  %v504_v17 = vld [vmem:[%s808_s1 + $0x84] ss:$16 sps:$4 sm:$0xff]   ;;  %v506_v18 = vld [vmem:[%s808_s1 + $0x8c] ss:$16 sps:$4 sm:$0xff]  }
   0x7   :  { %264 = vmatpush1.bf16.msra.mxu0 %v490_v7  ;;  %337 = vmatpush1.bf16.msra.mxu1 %v491_v8  ;;  %v508_v19 = vld [vmem:[%s808_s1 + $0x80] ss:$16 sps:$4 sm:$0xff]   ;;  %v509_v20 = vld [vmem:[%s808_s1 + $0x88] ss:$16 sps:$4 sm:$0xff]   ;;  %v510_v21 = vld [vmem:[%s808_s1 + $0xa4] ss:$16 sps:$4 sm:$0xff]  }
   0x8   :  { %265 = vmatprep.subr.bf16.mxu0 %v492_v9  ;;  %338 = vmatprep.subr.bf16.mxu1 %v494_v10  ;;  %v512_v22 = vld [vmem:[%s808_s1 + $0xac] ss:$16 sps:$4 sm:$0xff]   ;;  %v514_v23 = vld [vmem:[%s808_s1 + $0xa0] ss:$16 sps:$4 sm:$0xff]   ;;  %v515_v24 = vld [vmem:[%s808_s1 + $0xa8] ss:$16 sps:$4 sm:$0xff]  }
   0x9   :  { %v516_v25 = vld [vmem:[%s808_s1 + $0xc4] ss:$16 sps:$4 sm:$0xff]   ;;  %v518_v26 = vld [vmem:[%s808_s1 + $0xcc] ss:$16 sps:$4 sm:$0xff]   ;;  %v520_v27 = vld [vmem:[%s808_s1 + $0xc0] ss:$16 sps:$4 sm:$0xff]  }
   0xa   :  { %v521_v28 = vld [vmem:[%s808_s1 + $0xc8] ss:$16 sps:$4 sm:$0xff]   ;;  %v522_v29 = vld [vmem:[%s808_s1 + $0xe4] ss:$16 sps:$4 sm:$0xff]   ;;  %v524_v30 = vld [vmem:[%s808_s1 + $0xec] ss:$16 sps:$4 sm:$0xff]  }
   0xb   :  { %266 = vmatpush1.bf16.msra.mxu0 %v496_v11  ;;  %339 = vmatpush1.bf16.msra.mxu1 %v497_v12  ;;  %v526_v31 = vld [vmem:[%s808_s1 + $0xe0] ss:$16 sps:$4 sm:$0xff]   ;;  %v527_v32 = vld [vmem:[%s808_s1 + $0xe8] ss:$16 sps:$4 sm:$0xff]   ;;  %v58_v38 = vshrl.u32 %v57_v37, 7 }
   0xc   :  { %267 = vmatprep.subr.bf16.mxu0 %v498_v13  ;;  %340 = vmatprep.subr.bf16.mxu1 %v500_v14  ;;  %v528_v33 = vld [vmem:[%s809_s0] sm:$0xff]   ;;  %v529_v34 = vld [vmem:[%s809_s0 + $0x8] sm:$0xff]   ;;  %v530_v35 = vld [vmem:[%s809_s0 + $0x10] sm:$0xff]  }
   0xd   :  { %v531_v36 = vld [vmem:[%s809_s0 + $0x18] sm:$0xff]   ;;  %v59_v39 = vsub.s32 0, %v58_v38  ;;  %v67_v40 = vsub.s32 2, %v58_v38  ;;  %v55_v41 = vld [vmem:[%s810_s2] sm:$0xf]  ;;  %v63_v42 = vsub.s32 1, %v58_v38 }
   0xe   :  { %v71_v43 = vsub.s32 3, %v58_v38 }
   0xf   :  { %268 = vmatpush1.bf16.msra.mxu0 %v502_v15  ;;  %341 = vmatpush1.bf16.msra.mxu1 %v503_v16  ;;  %v672_v44 = vrot.slane %v55_v41, %v59_v39  ;;  %v674_v45 = vrot.slane %v55_v41, %v67_v40  ;;  %v676_v46 = vrot.slane %v55_v41, %v63_v42 }
  0x10   :  { %269 = vmatprep.subr.bf16.mxu0 %v504_v17  ;;  %342 = vmatprep.subr.bf16.mxu1 %v506_v18  ;;  %v678_v47 = vrot.slane %v55_v41, %v71_v43 }
  0x13   :  { %270 = vmatpush1.bf16.msra.mxu0 %v508_v19  ;;  %343 = vmatpush1.bf16.msra.mxu1 %v509_v20 }
  0x14   :  { %271 = vmatprep.subr.bf16.mxu0 %v510_v21  ;;  %344 = vmatprep.subr.bf16.mxu1 %v512_v22 }
  0x17   :  { %272 = vmatpush1.bf16.msra.mxu0 %v514_v23  ;;  %345 = vmatpush1.bf16.msra.mxu1 %v515_v24 }
  0x18   :  { %273 = vmatprep.subr.bf16.mxu0 %v516_v25  ;;  %346 = vmatprep.subr.bf16.mxu1 %v518_v26 }
  0x1b   :  { %274 = vmatpush1.bf16.msra.mxu0 %v520_v27  ;;  %347 = vmatpush1.bf16.msra.mxu1 %v521_v28 }
  0x1c   :  { %275 = vmatprep.subr.bf16.mxu0 %v522_v29  ;;  %348 = vmatprep.subr.bf16.mxu1 %v524_v30 }
  0x1f   :  { %276 = vmatpush1.bf16.msra.mxu0 %v526_v31  ;;  %349 = vmatpush1.bf16.msra.mxu1 %v527_v32 }
  0x22   :  { %294 = vmatmul.mubr.bf16.vlgmr.msra.gmra.mrb[0].mxu0 %v528_v33  ;;  %367 = vmatmul.mubr.bf16.vlgmr.msra.gmra.mrb[0].mxu1 %v528_v33 }
  0x23   :  { %303 = vmatprep.mubr.bf16.mxu0 %v532_v1  ;;  %376 = vmatprep.mubr.bf16.mxu1 %v532_v1 }
  0x2a   :  { %304 = vmatmul.mubr.bf16.gmra.mrb[4].mxu0 %v529_v34  ;;  %377 = vmatmul.mubr.bf16.gmra.mrb[4].mxu1 %v529_v34 }
  0x2b   :  { %313 = vmatprep.mubr.bf16.mxu0 %v532_v1  ;;  %386 = vmatprep.mubr.bf16.mxu1 %v532_v1 }
  0x32   :  { %314 = vmatmul.mubr.bf16.gmra.mrb[8].mxu0 %v530_v35  ;;  %387 = vmatmul.mubr.bf16.gmra.mrb[8].mxu1 %v530_v35 }
  0x33   :  { %323 = vmatprep.mubr.bf16.mxu0 %v532_v1  ;;  %396 = vmatprep.mubr.bf16.mxu1 %v532_v1 }
  0x3a   :  { %324 = vmatmul.mubr.bf16.gmra.mrb[12].mxu0 %v531_v36  ;;  %397 = vmatmul.mubr.bf16.gmra.mrb[12].mxu1 %v531_v36 }
  0xf5   :  { %v295_v48 = vpop.f32.mrb[0].mxu0  ;;  %v368_v49 = vpop.f32.mrb[0].mxu1 }
  0xf6   :  { %v296_v50 = vadd.f32 %v295_v48, %v672_v44  ;;  %v369_v51 = vadd.f32 %v368_v49, %v674_v45  ;;  %v297_v52 = vpop.f32.mrb[1].mxu0  ;;  %v370_v53 = vpop.f32.mrb[1].mxu1 }
  0xf7   :  { %v298_v54 = vadd.f32 %v297_v52, %v676_v46  ;;  %v371_v55 = vadd.f32 %v370_v53, %v678_v47  ;;  %v299_v56 = vpop.f32.mrb[2].mxu0  ;;  %v372_v57 = vpop.f32.mrb[2].mxu1 }
  0xf8   :  { %407 = vst [vmem:[%s811_s3] sm:$0xff] %v296_v50  ;;  %409 = vst [vmem:[%s811_s3 + $0x10] sm:$0xff] %v369_v51  ;;  %v300_v58 = vadd.f32 %v299_v56, %v672_v44  ;;  %v373_v59 = vadd.f32 %v372_v57, %v674_v45  ;;  %v301_v60 = vpop.f32.mrb[3].mxu0  ;;  %v374_v61 = vpop.f32.mrb[3].mxu1 }
  0xf9   :  { %408 = vst [vmem:[%s811_s3 + $0x8] sm:$0xff] %v298_v54  ;;  %410 = vst [vmem:[%s811_s3 + $0x18] sm:$0xff] %v371_v55  ;;  %v302_v62 = vadd.f32 %v301_v60, %v676_v46  ;;  %v375_v63 = vadd.f32 %v374_v61, %v678_v47 }
  0xfa   :  { %411 = vst [vmem:[%s811_s3 + $0x20] sm:$0xff] %v300_v58  ;;  %413 = vst [vmem:[%s811_s3 + $0x30] sm:$0xff] %v373_v59 }
  0xfb   :  { %412 = vst [vmem:[%s811_s3 + $0x28] sm:$0xff] %v302_v62  ;;  %414 = vst [vmem:[%s811_s3 + $0x38] sm:$0xff] %v375_v63 }
  0xfd   :  { %v305_v0 = vpop.f32.mrb[4].mxu0  ;;  %v378_v1 = vpop.f32.mrb[4].mxu1 }
  0xfe   :  { %v306_v2 = vadd.f32 %v305_v0, %v672_v44  ;;  %v379_v3 = vadd.f32 %v378_v1, %v674_v45  ;;  %v307_v4 = vpop.f32.mrb[5].mxu0  ;;  %v380_v5 = vpop.f32.mrb[5].mxu1 }
  0xff   :  { %v308_v6 = vadd.f32 %v307_v4, %v676_v46  ;;  %v381_v7 = vadd.f32 %v380_v5, %v678_v47  ;;  %v309_v8 = vpop.f32.mrb[6].mxu0  ;;  %v382_v9 = vpop.f32.mrb[6].mxu1 }
 0x100   :  { %415 = vst [vmem:[%s811_s3 + $0x40] sm:$0xff] %v306_v2  ;;  %417 = vst [vmem:[%s811_s3 + $0x50] sm:$0xff] %v379_v3  ;;  %v310_v10 = vadd.f32 %v309_v8, %v672_v44  ;;  %v383_v11 = vadd.f32 %v382_v9, %v674_v45  ;;  %v311_v12 = vpop.f32.mrb[7].mxu0  ;;  %v384_v13 = vpop.f32.mrb[7].mxu1 }
 0x101   :  { %416 = vst [vmem:[%s811_s3 + $0x48] sm:$0xff] %v308_v6  ;;  %418 = vst [vmem:[%s811_s3 + $0x58] sm:$0xff] %v381_v7  ;;  %v312_v14 = vadd.f32 %v311_v12, %v676_v46  ;;  %v385_v15 = vadd.f32 %v384_v13, %v678_v47 }
 0x102   :  { %419 = vst [vmem:[%s811_s3 + $0x60] sm:$0xff] %v310_v10  ;;  %421 = vst [vmem:[%s811_s3 + $0x70] sm:$0xff] %v383_v11 }
 0x103   :  { %420 = vst [vmem:[%s811_s3 + $0x68] sm:$0xff] %v312_v14  ;;  %422 = vst [vmem:[%s811_s3 + $0x78] sm:$0xff] %v385_v15 }
 0x105   :  { %v315_v16 = vpop.f32.mrb[8].mxu0  ;;  %v388_v17 = vpop.f32.mrb[8].mxu1 }
 0x106   :  { %v316_v18 = vadd.f32 %v315_v16, %v672_v44  ;;  %v389_v19 = vadd.f32 %v388_v17, %v674_v45  ;;  %v317_v20 = vpop.f32.mrb[9].mxu0  ;;  %v390_v21 = vpop.f32.mrb[9].mxu1 }
 0x107   :  { %v318_v22 = vadd.f32 %v317_v20, %v676_v46  ;;  %v391_v23 = vadd.f32 %v390_v21, %v678_v47  ;;  %v319_v24 = vpop.f32.mrb[10].mxu0  ;;  %v392_v25 = vpop.f32.mrb[10].mxu1 }
 0x108   :  { %423 = vst [vmem:[%s811_s3 + $0x80] sm:$0xff] %v316_v18  ;;  %425 = vst [vmem:[%s811_s3 + $0x90] sm:$0xff] %v389_v19  ;;  %v320_v26 = vadd.f32 %v319_v24, %v672_v44  ;;  %v393_v27 = vadd.f32 %v392_v25, %v674_v45  ;;  %v321_v28 = vpop.f32.mrb[11].mxu0  ;;  %v394_v29 = vpop.f32.mrb[11].mxu1 }
 0x109   :  { %424 = vst [vmem:[%s811_s3 + $0x88] sm:$0xff] %v318_v22  ;;  %426 = vst [vmem:[%s811_s3 + $0x98] sm:$0xff] %v391_v23  ;;  %v322_v30 = vadd.f32 %v321_v28, %v676_v46  ;;  %v395_v31 = vadd.f32 %v394_v29, %v678_v47 }
 0x10a   :  { %427 = vst [vmem:[%s811_s3 + $0xa0] sm:$0xff] %v320_v26  ;;  %429 = vst [vmem:[%s811_s3 + $0xb0] sm:$0xff] %v393_v27 }
 0x10b   :  { %428 = vst [vmem:[%s811_s3 + $0xa8] sm:$0xff] %v322_v30  ;;  %430 = vst [vmem:[%s811_s3 + $0xb8] sm:$0xff] %v395_v31 }
 0x10d   :  { %v325_v32 = vpop.f32.mrb[12].mxu0  ;;  %v398_v33 = vpop.f32.mrb[12].mxu1 }
 0x10e   :  { %v326_v34 = vadd.f32 %v325_v32, %v672_v44  ;;  %v399_v35 = vadd.f32 %v398_v33, %v674_v45  ;;  %v327_v36 = vpop.f32.mrb[13].mxu0  ;;  %v400_v37 = vpop.f32.mrb[13].mxu1 }
 0x10f   :  { %v328_v38 = vadd.f32 %v327_v36, %v676_v46  ;;  %v401_v39 = vadd.f32 %v400_v37, %v678_v47  ;;  %v329_v40 = vpop.f32.mrb[14].mxu0  ;;  %v402_v41 = vpop.f32.mrb[14].mxu1 }
 0x110   :  { %431 = vst [vmem:[%s811_s3 + $0xc0] sm:$0xff] %v326_v34  ;;  %433 = vst [vmem:[%s811_s3 + $0xd0] sm:$0xff] %v399_v35  ;;  %v330_v42 = vadd.f32 %v329_v40, %v672_v44  ;;  %v403_v43 = vadd.f32 %v402_v41, %v674_v45  ;;  %v331_v48 = vpop.f32.mrb[15].mxu0  ;;  %v404_v49 = vpop.f32.mrb[15].mxu1 }
 0x111   :  { %432 = vst [vmem:[%s811_s3 + $0xc8] sm:$0xff] %v328_v38  ;;  %434 = vst [vmem:[%s811_s3 + $0xd8] sm:$0xff] %v401_v39  ;;  %v332_v50 = vadd.f32 %v331_v48, %v676_v46  ;;  %v405_v51 = vadd.f32 %v404_v49, %v678_v47 }
 0x112   :  { %435 = vst [vmem:[%s811_s3 + $0xe0] sm:$0xff] %v330_v42  ;;  %437 = vst [vmem:[%s811_s3 + $0xf0] sm:$0xff] %v403_v43 }
 0x113   :  { %436 = vst [vmem:[%s811_s3 + $0xe8] sm:$0xff] %v332_v50  ;;  %438 = vst [vmem:[%s811_s3 + $0xf8] sm:$0xff] %v405_v51 }

// kernel: forward.5
= control target key start
LH: loop header
LB: loop body
LE: loop exit
PB: predicated region body
PF: predicated region fallthrough
CT: control target
= control target key end

     0   :  { %v313_v1 = vmov 0   ;;  %v41_v21 = vlaneseq  ;;  %s445_s1 = inlined_call_operand.vmem [shape: bf16[128,256], index: 1, kind: input, shape index: {}]   ;;  %s446_s0 = inlined_call_operand.vmem [shape: bf16[64,128], index: 0, kind: input, shape index: {}]   ;;  %s447_s2 = inlined_call_operand.vmem [shape: f32[1,256], index: 2, kind: input, shape index: {}]   ;;  %s448_s3 = inlined_call_operand.vmem [shape: f32[64,256], index: 3, kind: output, shape index: {}]  }
   0x1   :  { %v285_v0 = vld [vmem:[%s445_s1 + $0x4] ss:$8 sps:$4 sm:$0xff]   ;;  %187 = vmatprep.mubr.bf16.mxu0 %v313_v1  ;;  %207 = vmatprep.mubr.bf16.mxu1 %v313_v1  ;;  %v287_v2 = vld [vmem:[%s445_s1] ss:$8 sps:$4 sm:$0xff]   ;;  %v288_v3 = vld [vmem:[%s445_s1 + $0x14] ss:$8 sps:$4 sm:$0xff]  }
   0x2   :  { %155 = vmatprep.subr.bf16.mxu0 %v285_v0  ;;  %268 = vmatprep.subr.bf16.mxu1 %v285_v0  ;;  %v290_v4 = vld [vmem:[%s445_s1 + $0x10] ss:$8 sps:$4 sm:$0xff]   ;;  %v291_v5 = vld [vmem:[%s445_s1 + $0x24] ss:$8 sps:$4 sm:$0xff]   ;;  %v293_v6 = vld [vmem:[%s445_s1 + $0x20] ss:$8 sps:$4 sm:$0xff]  }
   0x3   :  { %156 = vmatpush1.bf16.msra.mxu0 %v287_v2  ;;  %276 = vmatpush1.bf16.msra.mxu1 %v287_v2  ;;  %v294_v7 = vld [vmem:[%s445_s1 + $0x34] ss:$8 sps:$4 sm:$0xff]   ;;  %v296_v8 = vld [vmem:[%s445_s1 + $0x30] ss:$8 sps:$4 sm:$0xff]   ;;  %v297_v9 = vld [vmem:[%s445_s1 + $0x44] ss:$8 sps:$4 sm:$0xff]  }
   0x4   :  { %157 = vmatprep.subr.bf16.mxu0 %v288_v3  ;;  %269 = vmatprep.subr.bf16.mxu1 %v288_v3  ;;  %v299_v10 = vld [vmem:[%s445_s1 + $0x40] ss:$8 sps:$4 sm:$0xff]   ;;  %v300_v11 = vld [vmem:[%s445_s1 + $0x54] ss:$8 sps:$4 sm:$0xff]   ;;  %v302_v12 = vld [vmem:[%s445_s1 + $0x50] ss:$8 sps:$4 sm:$0xff]  }
   0x5   :  { %v303_v13 = vld [vmem:[%s445_s1 + $0x64] ss:$8 sps:$4 sm:$0xff]   ;;  %v305_v14 = vld [vmem:[%s445_s1 + $0x60] ss:$8 sps:$4 sm:$0xff]   ;;  %v306_v15 = vld [vmem:[%s445_s1 + $0x74] ss:$8 sps:$4 sm:$0xff]  }
   0x6   :  { %v308_v16 = vld [vmem:[%s445_s1 + $0x70] ss:$8 sps:$4 sm:$0xff]   ;;  %v309_v17 = vld [vmem:[%s446_s0] sm:$0xff]   ;;  %v311_v19 = vld [vmem:[%s446_s0 + $0x8] sm:$0xff]   ;;  %v42_v22 = vshrl.u32 %v41_v21, 7 }
   0x7   :  { %158 = vmatpush1.bf16.msra.mxu0 %v290_v4  ;;  %277 = vmatpush1.bf16.msra.mxu1 %v290_v4  ;;  %v310_v18 = vld [vmem:[%s446_s0 + $0x10] sm:$0xff]   ;;  %v312_v20 = vld [vmem:[%s446_s0 + $0x18] sm:$0xff]   ;;  %v39_v24 = vld [vmem:[%s447_s2] sm:$0x3] }
   0x8   :  { %159 = vmatprep.subr.bf16.mxu0 %v291_v5  ;;  %270 = vmatprep.subr.bf16.mxu1 %v291_v5  ;;  %v43_v23 = vsub.s32 0, %v42_v22  ;;  %v47_v25 = vsub.s32 1, %v42_v22 }
   0xa   :  { %v44_v26 = vrot.slane %v39_v24, %v43_v23  ;;  %v48_v27 = vrot.slane %v39_v24, %v47_v25 }
   0xb   :  { %160 = vmatpush1.bf16.msra.mxu0 %v293_v6  ;;  %278 = vmatpush1.bf16.msra.mxu1 %v293_v6 }
   0xc   :  { %161 = vmatprep.subr.bf16.mxu0 %v294_v7  ;;  %271 = vmatprep.subr.bf16.mxu1 %v294_v7 }
   0xf   :  { %162 = vmatpush1.bf16.msra.mxu0 %v296_v8  ;;  %279 = vmatpush1.bf16.msra.mxu1 %v296_v8 }
  0x10   :  { %163 = vmatprep.subr.bf16.mxu0 %v297_v9  ;;  %272 = vmatprep.subr.bf16.mxu1 %v297_v9 }
  0x13   :  { %164 = vmatpush1.bf16.msra.mxu0 %v299_v10  ;;  %280 = vmatpush1.bf16.msra.mxu1 %v299_v10 }
  0x14   :  { %165 = vmatprep.subr.bf16.mxu0 %v300_v11  ;;  %273 = vmatprep.subr.bf16.mxu1 %v300_v11 }
  0x17   :  { %166 = vmatpush1.bf16.msra.mxu0 %v302_v12  ;;  %281 = vmatpush1.bf16.msra.mxu1 %v302_v12 }
  0x18   :  { %167 = vmatprep.subr.bf16.mxu0 %v303_v13  ;;  %274 = vmatprep.subr.bf16.mxu1 %v303_v13 }
  0x1b   :  { %168 = vmatpush1.bf16.msra.mxu0 %v305_v14  ;;  %282 = vmatpush1.bf16.msra.mxu1 %v305_v14 }
  0x1c   :  { %169 = vmatprep.subr.bf16.mxu0 %v306_v15  ;;  %275 = vmatprep.subr.bf16.mxu1 %v306_v15 }
  0x1f   :  { %170 = vmatpush1.bf16.msra.mxu0 %v308_v16  ;;  %283 = vmatpush1.bf16.msra.mxu1 %v308_v16 }
  0x22   :  { %188 = vmatmul.mubr.bf16.vlgmr.msra.gmra.mrb[0].mxu0 %v309_v17  ;;  %208 = vmatmul.mubr.bf16.vlgmr.msra.gmra.mrb[0].mxu1 %v310_v18 }
  0x23   :  { %197 = vmatprep.mubr.bf16.mxu0 %v313_v1  ;;  %217 = vmatprep.mubr.bf16.mxu1 %v313_v1 }
  0x2a   :  { %198 = vmatmul.mubr.bf16.gmra.mrb[4].mxu0 %v311_v19  ;;  %218 = vmatmul.mubr.bf16.gmra.mrb[4].mxu1 %v312_v20 }
  0xf5   :  { %v189_v28 = vpop.f32.mrb[0].mxu0  ;;  %v209_v29 = vpop.f32.mrb[0].mxu1 }
  0xf6   :  { %v190_v30 = vadd.f32 %v189_v28, %v44_v26  ;;  %v210_v31 = vadd.f32 %v209_v29, %v44_v26  ;;  %v191_v32 = vpop.f32.mrb[1].mxu0  ;;  %v211_v33 = vpop.f32.mrb[1].mxu1 }
  0xf7   :  { %v192_v34 = vadd.f32 %v191_v32, %v48_v27  ;;  %v212_v35 = vadd.f32 %v211_v33, %v48_v27  ;;  %v193_v36 = vpop.f32.mrb[2].mxu0  ;;  %v213_v37 = vpop.f32.mrb[2].mxu1 }
  0xf8   :  { %228 = vst [vmem:[%s448_s3] sm:$0xff] %v190_v30  ;;  %236 = vst [vmem:[%s448_s3 + $0x40] sm:$0xff] %v210_v31  ;;  %v194_v38 = vadd.f32 %v193_v36, %v44_v26  ;;  %v214_v39 = vadd.f32 %v213_v37, %v44_v26  ;;  %v195_v40 = vpop.f32.mrb[3].mxu0  ;;  %v215_v41 = vpop.f32.mrb[3].mxu1 }
  0xf9   :  { %229 = vst [vmem:[%s448_s3 + $0x8] sm:$0xff] %v192_v34  ;;  %237 = vst [vmem:[%s448_s3 + $0x48] sm:$0xff] %v212_v35  ;;  %v196_v42 = vadd.f32 %v195_v40, %v48_v27  ;;  %v216_v43 = vadd.f32 %v215_v41, %v48_v27 }
  0xfa   :  { %230 = vst [vmem:[%s448_s3 + $0x10] sm:$0xff] %v194_v38  ;;  %238 = vst [vmem:[%s448_s3 + $0x50] sm:$0xff] %v214_v39 }
  0xfb   :  { %231 = vst [vmem:[%s448_s3 + $0x18] sm:$0xff] %v196_v42  ;;  %239 = vst [vmem:[%s448_s3 + $0x58] sm:$0xff] %v216_v43 }
  0xfd   :  { %v199_v44 = vpop.f32.mrb[4].mxu0  ;;  %v219_v45 = vpop.f32.mrb[4].mxu1 }
  0xfe   :  { %v200_v46 = vadd.f32 %v199_v44, %v44_v26  ;;  %v220_v47 = vadd.f32 %v219_v45, %v44_v26  ;;  %v201_v48 = vpop.f32.mrb[5].mxu0  ;;  %v221_v49 = vpop.f32.mrb[5].mxu1 }
  0xff   :  { %v202_v50 = vadd.f32 %v201_v48, %v48_v27  ;;  %v222_v51 = vadd.f32 %v221_v49, %v48_v27  ;;  %v203_v52 = vpop.f32.mrb[6].mxu0  ;;  %v223_v53 = vpop.f32.mrb[6].mxu1 }
 0x100   :  { %232 = vst [vmem:[%s448_s3 + $0x20] sm:$0xff] %v200_v46  ;;  %240 = vst [vmem:[%s448_s3 + $0x60] sm:$0xff] %v220_v47  ;;  %v204_v54 = vadd.f32 %v203_v52, %v44_v26  ;;  %v224_v55 = vadd.f32 %v223_v53, %v44_v26  ;;  %v205_v56 = vpop.f32.mrb[7].mxu0  ;;  %v225_v57 = vpop.f32.mrb[7].mxu1 }
 0x101   :  { %233 = vst [vmem:[%s448_s3 + $0x28] sm:$0xff] %v202_v50  ;;  %241 = vst [vmem:[%s448_s3 + $0x68] sm:$0xff] %v222_v51  ;;  %v206_v58 = vadd.f32 %v205_v56, %v48_v27  ;;  %v226_v59 = vadd.f32 %v225_v57, %v48_v27 }
 0x102   :  { %234 = vst [vmem:[%s448_s3 + $0x30] sm:$0xff] %v204_v54  ;;  %242 = vst [vmem:[%s448_s3 + $0x70] sm:$0xff] %v224_v55 }
 0x103   :  { %235 = vst [vmem:[%s448_s3 + $0x38] sm:$0xff] %v206_v58  ;;  %243 = vst [vmem:[%s448_s3 + $0x78] sm:$0xff] %v226_v59 }

// kernel: forward.4
= control target key start
LH: loop header
LB: loop body
LE: loop exit
PB: predicated region body
PF: predicated region fallthrough
CT: control target
= control target key end

     0   :  { %v3081_v1 = vmov 0   ;;  %v3082_v33 = vmov 0.0|0.0   ;;  %s3834_s1 = inlined_call_operand.vmem [shape: bf16[128,512], index: 1, kind: input, shape index: {}]   ;;  %s3835_s0 = inlined_call_operand.vmem [shape: f32[8,8,512], index: 0, kind: input, shape index: {}]   ;;  %s3836_s2 = inlined_call_operand.vmem [shape: bf16[8,8,128], index: 2, kind: output, shape index: {}]  }
   0x1   :  { %v3101_v0 = vld [vmem:[%s3834_s1 + $0x4] ss:$16 sps:$4 sm:$0xff]   ;;  %249 = vmatprep.mubr.bf16.mxu0 %v3081_v1  ;;  %290 = vmatprep.mubr.bf16.mxu1 %v3081_v1  ;;  %v3108_v2 = vld [vmem:[%s3834_s1] ss:$16 sps:$4 sm:$0xff]   ;;  %v3131_v6 = vld [vmem:[%s3834_s1 + $0xc] ss:$16 sps:$4 sm:$0xff]  }
   0x2   :  { %217 = vmatprep.subr.bf16.mxu0 %v3101_v0  ;;  %v3114_v3 = vld [vmem:[%s3834_s1 + $0x24] ss:$16 sps:$4 sm:$0xff]   ;;  %v3120_v4 = vld [vmem:[%s3834_s1 + $0x20] ss:$16 sps:$4 sm:$0xff]   ;;  %v3136_v7 = vld [vmem:[%s3834_s1 + $0x8] ss:$16 sps:$4 sm:$0xff]   ;;  %258 = vmatprep.subr.bf16.mxu1 %v3131_v6 }
   0x3   :  { %218 = vmatpush1.bf16.msra.mxu0 %v3108_v2  ;;  %v3126_v5 = vld [vmem:[%s3834_s1 + $0x44] ss:$16 sps:$4 sm:$0xff]   ;;  %v3142_v8 = vld [vmem:[%s3834_s1 + $0x40] ss:$16 sps:$4 sm:$0xff]   ;;  %259 = vmatpush1.bf16.msra.mxu1 %v3136_v7  ;;  %v3155_v10 = vld [vmem:[%s3834_s1 + $0x2c] ss:$16 sps:$4 sm:$0xff]  }
   0x4   :  { %219 = vmatprep.subr.bf16.mxu0 %v3114_v3  ;;  %v3149_v9 = vld [vmem:[%s3834_s1 + $0x64] ss:$16 sps:$4 sm:$0xff]   ;;  %v3160_v11 = vld [vmem:[%s3834_s1 + $0x28] ss:$16 sps:$4 sm:$0xff]   ;;  %260 = vmatprep.subr.bf16.mxu1 %v3155_v10  ;;  %v3167_v12 = vld [vmem:[%s3834_s1 + $0x60] ss:$16 sps:$4 sm:$0xff]  }
   0x5   :  { %v3172_v13 = vld [vmem:[%s3834_s1 + $0x84] ss:$16 sps:$4 sm:$0xff]   ;;  %v3177_v14 = vld [vmem:[%s3834_s1 + $0x4c] ss:$16 sps:$4 sm:$0xff]   ;;  %v3184_v15 = vld [vmem:[%s3834_s1 + $0x48] ss:$16 sps:$4 sm:$0xff]  }
   0x6   :  { %v3190_v16 = vld [vmem:[%s3834_s1 + $0x6c] ss:$16 sps:$4 sm:$0xff]   ;;  %v3196_v17 = vld [vmem:[%s3834_s1 + $0x80] ss:$16 sps:$4 sm:$0xff]   ;;  %v3202_v18 = vld [vmem:[%s3834_s1 + $0xa4] ss:$16 sps:$4 sm:$0xff]  }
   0x7   :  { %220 = vmatpush1.bf16.msra.mxu0 %v3120_v4  ;;  %261 = vmatpush1.bf16.msra.mxu1 %v3160_v11  ;;  %v3208_v19 = vld [vmem:[%s3834_s1 + $0x68] ss:$16 sps:$4 sm:$0xff]   ;;  %v3214_v20 = vld [vmem:[%s3834_s1 + $0x8c] ss:$16 sps:$4 sm:$0xff]   ;;  %v3220_v21 = vld [vmem:[%s3834_s1 + $0xa0] ss:$16 sps:$4 sm:$0xff]  }
   0x8   :  { %221 = vmatprep.subr.bf16.mxu0 %v3126_v5  ;;  %262 = vmatprep.subr.bf16.mxu1 %v3177_v14  ;;  %v3225_v22 = vld [vmem:[%s3834_s1 + $0xc4] ss:$16 sps:$4 sm:$0xff]   ;;  %v3232_v23 = vld [vmem:[%s3834_s1 + $0x88] ss:$16 sps:$4 sm:$0xff]   ;;  %v3237_v24 = vld [vmem:[%s3834_s1 + $0xc0] ss:$16 sps:$4 sm:$0xff]  }
   0x9   :  { %v3243_v25 = vld [vmem:[%s3834_s1 + $0xac] ss:$16 sps:$4 sm:$0xff]   ;;  %v3248_v26 = vld [vmem:[%s3834_s1 + $0xe4] ss:$16 sps:$4 sm:$0xff]   ;;  %v3253_v27 = vld [vmem:[%s3834_s1 + $0xa8] ss:$16 sps:$4 sm:$0xff]  }
   0xa   :  { %v3259_v28 = vld [vmem:[%s3834_s1 + $0xcc] ss:$16 sps:$4 sm:$0xff]   ;;  %v3266_v29 = vld [vmem:[%s3834_s1 + $0xe0] ss:$16 sps:$4 sm:$0xff]   ;;  %v3272_v30 = vld [vmem:[%s3834_s1 + $0xc8] ss:$16 sps:$4 sm:$0xff]  }
   0xb   :  { %222 = vmatpush1.bf16.msra.mxu0 %v3142_v8  ;;  %263 = vmatpush1.bf16.msra.mxu1 %v3184_v15  ;;  %v3278_v31 = vld [vmem:[%s3834_s1 + $0xec] ss:$16 sps:$4 sm:$0xff]   ;;  %v3288_v32 = vld [vmem:[%s3834_s1 + $0xe8] ss:$16 sps:$4 sm:$0xff]   ;;  %v20_v34 = vld [vmem:[%s3835_s0] sm:$0xff] }
   0xc   :  { %223 = vmatprep.subr.bf16.mxu0 %v3149_v9  ;;  %264 = vmatprep.subr.bf16.mxu1 %v3190_v16  ;;  %v21_v35 = vld [vmem:[%s3835_s0 + $0x8] sm:$0xff]  ;;  %v23_v44 = vld [vmem:[%s3835_s0 + $0x18] sm:$0xff]  ;;  %v22_v50 = vld [vmem:[%s3835_s0 + $0x10] sm:$0xff] }
   0xf   :  { %224 = vmatpush1.bf16.msra.mxu0 %v3167_v12  ;;  %265 = vmatpush1.bf16.msra.mxu1 %v3208_v19 }
  0x10   :  { %225 = vmatprep.subr.bf16.mxu0 %v3172_v13  ;;  %266 = vmatprep.subr.bf16.mxu1 %v3214_v20 }
  0x13   :  { %226 = vmatpush1.bf16.msra.mxu0 %v3196_v17  ;;  %267 = vmatpush1.bf16.msra.mxu1 %v3232_v23 }
  0x14   :  { %227 = vmatprep.subr.bf16.mxu0 %v3202_v18  ;;  %268 = vmatprep.subr.bf16.mxu1 %v3243_v25 }
  0x17   :  { %228 = vmatpush1.bf16.msra.mxu0 %v3220_v21  ;;  %269 = vmatpush1.bf16.msra.mxu1 %v3253_v27 }
  0x18   :  { %229 = vmatprep.subr.bf16.mxu0 %v3225_v22  ;;  %270 = vmatprep.subr.bf16.mxu1 %v3259_v28 }
  0x1b   :  { %230 = vmatpush1.bf16.msra.mxu0 %v3237_v24  ;;  %271 = vmatpush1.bf16.msra.mxu1 %v3272_v30 }
  0x1c   :  { %231 = vmatprep.subr.bf16.mxu0 %v3248_v26  ;;  %272 = vmatprep.subr.bf16.mxu1 %v3278_v31 }
  0x1f   :  { %232 = vmatpush1.bf16.msra.mxu0 %v3266_v29  ;;  %273 = vmatpush1.bf16.msra.mxu1 %v3288_v32 }
  0x20   :  { %531 = vmatprep.subr.bf16.mxu0 %v3101_v0  ;;  %572 = vmatprep.subr.bf16.mxu1 %v3131_v6 }
  0x22   :  { %250 = vmatmul.mubr.bf16.vlgmr.msra.gmra.mrb[0].mxu0 %v3082_v33  ;;  %291 = vmatmul.mubr.bf16.vlgmr.msra.gmra.mrb[0].mxu1 %v3082_v33 }
  0x23   :  { %532 = vmatpush1.bf16.msra.mxu0 %v3108_v2  ;;  %563 = vmatprep.mubr.bf16.mxu0 %v3081_v1 }
  0x24   :  { %533 = vmatprep.subr.bf16.mxu0 %v3114_v3  ;;  %573 = vmatpush1.bf16.msra.mxu1 %v3136_v7 }
  0x25   :  { %574 = vmatprep.subr.bf16.mxu1 %v3155_v10  ;;  %604 = vmatprep.mubr.bf16.mxu1 %v3081_v1 }
  0x27   :  { %534 = vmatpush1.bf16.msra.mxu0 %v3120_v4 }
  0x28   :  { %535 = vmatprep.subr.bf16.mxu0 %v3126_v5  ;;  %575 = vmatpush1.bf16.msra.mxu1 %v3160_v11 }
  0x29   :  { %576 = vmatprep.subr.bf16.mxu1 %v3177_v14 }
  0x2b   :  { %536 = vmatpush1.bf16.msra.mxu0 %v3142_v8 }
  0x2c   :  { %537 = vmatprep.subr.bf16.mxu0 %v3149_v9  ;;  %577 = vmatpush1.bf16.msra.mxu1 %v3184_v15 }
  0x2d   :  { %578 = vmatprep.subr.bf16.mxu1 %v3190_v16 }
  0x2f   :  { %538 = vmatpush1.bf16.msra.mxu0 %v3167_v12 }
  0x30   :  { %539 = vmatprep.subr.bf16.mxu0 %v3172_v13  ;;  %579 = vmatpush1.bf16.msra.mxu1 %v3208_v19 }
  0x31   :  { %580 = vmatprep.subr.bf16.mxu1 %v3214_v20 }
  0x33   :  { %540 = vmatpush1.bf16.msra.mxu0 %v3196_v17 }
  0x34   :  { %541 = vmatprep.subr.bf16.mxu0 %v3202_v18  ;;  %581 = vmatpush1.bf16.msra.mxu1 %v3232_v23 }
  0x35   :  { %582 = vmatprep.subr.bf16.mxu1 %v3243_v25 }
  0x37   :  { %542 = vmatpush1.bf16.msra.mxu0 %v3220_v21 }
  0x38   :  { %543 = vmatprep.subr.bf16.mxu0 %v3225_v22  ;;  %583 = vmatpush1.bf16.msra.mxu1 %v3253_v27 }
  0x39   :  { %584 = vmatprep.subr.bf16.mxu1 %v3259_v28 }
  0x3b   :  { %544 = vmatpush1.bf16.msra.mxu0 %v3237_v24 }
  0x3c   :  { %545 = vmatprep.subr.bf16.mxu0 %v3248_v26  ;;  %585 = vmatpush1.bf16.msra.mxu1 %v3272_v30 }
  0x3d   :  { %586 = vmatprep.subr.bf16.mxu1 %v3278_v31 }
  0x3f   :  { %546 = vmatpush1.bf16.msra.mxu0 %v3266_v29 }
  0x40   :  { %846 = vmatprep.subr.bf16.mxu0 %v3101_v0  ;;  %587 = vmatpush1.bf16.msra.mxu1 %v3288_v32 }
  0x41   :  { %887 = vmatprep.subr.bf16.mxu1 %v3131_v6 }
  0xf5   :  { %v251_v36 = vpop.f32.mrb[0].mxu0  ;;  %v292_v45 = vpop.f32.mrb[0].mxu1 }
  0xf6   :  { %v299_v37 = vadd.f32 %v251_v36, %v20_v34  ;;  %v253_v38 = vpop.f32.mrb[1].mxu0  ;;  %v294_v46 = vpop.f32.mrb[1].mxu1  ;;  %v301_v52 = vadd.f32 %v292_v45, %v22_v50  ;;  %v2578_v50 = vld [vmem:[%s3835_s0 + $0x38] sm:$0xff] }
  0xf7   :  { %v300_v39 = vadd.f32 %v253_v38, %v21_v35  ;;  %v255_v40 = vpop.f32.mrb[2].mxu0  ;;  %v302_v47 = vadd.f32 %v294_v46, %v23_v44  ;;  %v296_v48 = vpop.f32.mrb[2].mxu1  ;;  %v2575_v38 = vld [vmem:[%s3835_s0 + $0x20] sm:$0xff] }
  0xf8   :  { %v2572_v41 = vmul.f32 -1.442695, %v299_v37  ;;  %v256_v42 = vpop.f32.mrb[3].mxu0  ;;  %v297_v49 = vpop.f32.mrb[3].mxu1 }
  0xf9   :  { %v2573_v43 = vmul.f32 -1.442695, %v300_v39  ;;  %v2574_v51 = vmul.f32 -1.442695, %v302_v47  ;;  %v2576_v39 = vld [vmem:[%s3835_s0 + $0x28] sm:$0xff] }
  0xfa   :  { %2953 = vpow2.f32 %v2572_v41 }
  0xfb   :  { %2955 = vpow2.f32 %v2573_v43 }
  0xfc   :  { %2957 = vpow2.f32 %v2574_v51 }
  0xfd   :  { %2959 = vtanh.f32 %v301_v52  ;;  %v2577_v52 = vld [vmem:[%s3835_s0 + $0x30] sm:$0xff] }
 0x104   :  { %v2954_v53 = vpop.eup %2953 }
 0x105   :  { %v2956_v54 = vpop.eup %2955  ;;  %v306_v55 = vadd.f32 1.0, %v2954_v53 }
 0x106   :  { %v312_v56 = vadd.f32 1.0, %v2956_v54  ;;  %v2958_v57 = vpop.eup %2957 }
 0x107   :  { %2961 = vrcp.f32 %v306_v55  ;;  %v2960_v58 = vpop.eup %2959  ;;  %v319_v60 = vadd.f32 1.0, %v2958_v57 }
 0x108   :  { %2963 = vrcp.f32 %v312_v56 }
 0x109   :  { %2965 = vrcp.f32 %v319_v60 }
 0x111   :  { %v2962_v59 = vpop.eup %2961 }
 0x112   :  { %v2964_v61 = vpop.eup %2963  ;;  %v323_v62 = vmul.f32 %v2962_v59, %v2960_v58 }
 0x113   :  { %v322_v63 = vmul.f32 0.0, %v2964_v61  ;;  %v2966_v34 = vpop.eup %2965 }
 0x115   :  { %v3340_v33 = vadd.f32 %v323_v62, %v322_v63 }
 0x117   :  { %2967 = vtanh.f32 %v3340_v33 }
 0x121   :  { %v2968_v35 = vpop.eup %2967 }
 0x122   :  { %v326_v36 = vmul.f32 %v2968_v35, %v2966_v34 }
 0x124   :  { %v329_v37 = vpack.c.bf16 %v326_v36, %v326_v36 }
 0x126   :  { %330 = vst [vmem:[%s3836_s2] sm:$0xf] %v329_v37  ;;  %564 = vmatmul.mubr.bf16.vlgmr.msra.gmra.mrb[4].mxu0 %v329_v37  ;;  %605 = vmatmul.mubr.bf16.vlgmr.msra.gmra.mrb[4].mxu1 %v329_v37 }
 0x127   :  { %847 = vmatpush1.bf16.msra.mxu0 %v3108_v2  ;;  %888 = vmatpush1.bf16.msra.mxu1 %v3136_v7 }
 0x128   :  { %848 = vmatprep.subr.bf16.mxu0 %v3114_v3  ;;  %889 = vmatprep.subr.bf16.mxu1 %v3155_v10 }
 0x129   :  { %878 = vmatprep.mubr.bf16.mxu0 %v3081_v1  ;;  %919 = vmatprep.mubr.bf16.mxu1 %v3081_v1 }
 0x12b   :  { %849 = vmatpush1.bf16.msra.mxu0 %v3120_v4  ;;  %890 = vmatpush1.bf16.msra.mxu1 %v3160_v11 }
 0x12c   :  { %850 = vmatprep.subr.bf16.mxu0 %v3126_v5  ;;  %891 = vmatprep.subr.bf16.mxu1 %v3177_v14 }
 0x12f   :  { %851 = vmatpush1.bf16.msra.mxu0 %v3142_v8  ;;  %892 = vmatpush1.bf16.msra.mxu1 %v3184_v15 }
 0x130   :  { %852 = vmatprep.subr.bf16.mxu0 %v3149_v9  ;;  %893 = vmatprep.subr.bf16.mxu1 %v3190_v16 }
 0x133   :  { %853 = vmatpush1.bf16.msra.mxu0 %v3167_v12  ;;  %894 = vmatpush1.bf16.msra.mxu1 %v3208_v19 }
 0x134   :  { %854 = vmatprep.subr.bf16.mxu0 %v3172_v13  ;;  %895 = vmatprep.subr.bf16.mxu1 %v3214_v20 }
 0x137   :  { %855 = vmatpush1.bf16.msra.mxu0 %v3196_v17  ;;  %896 = vmatpush1.bf16.msra.mxu1 %v3232_v23 }
 0x138   :  { %856 = vmatprep.subr.bf16.mxu0 %v3202_v18  ;;  %897 = vmatprep.subr.bf16.mxu1 %v3243_v25 }
 0x13b   :  { %857 = vmatpush1.bf16.msra.mxu0 %v3220_v21  ;;  %898 = vmatpush1.bf16.msra.mxu1 %v3253_v27 }
 0x13c   :  { %858 = vmatprep.subr.bf16.mxu0 %v3225_v22  ;;  %899 = vmatprep.subr.bf16.mxu1 %v3259_v28 }
 0x13f   :  { %859 = vmatpush1.bf16.msra.mxu0 %v3237_v24  ;;  %900 = vmatpush1.bf16.msra.mxu1 %v3272_v30 }
 0x140   :  { %860 = vmatprep.subr.bf16.mxu0 %v3248_v26  ;;  %901 = vmatprep.subr.bf16.mxu1 %v3278_v31 }
 0x143   :  { %861 = vmatpush1.bf16.msra.mxu0 %v3266_v29  ;;  %902 = vmatpush1.bf16.msra.mxu1 %v3288_v32 }
 0x144   :  { %1161 = vmatprep.subr.bf16.mxu0 %v3101_v0  ;;  %1202 = vmatprep.subr.bf16.mxu1 %v3131_v6 }
 0x1f9   :  { %v565_v40 = vpop.f32.mrb[4].mxu0  ;;  %v606_v41 = vpop.f32.mrb[4].mxu1 }
 0x1fa   :  { %v613_v42 = vadd.f32 %v2575_v38, %v565_v40  ;;  %v567_v43 = vpop.f32.mrb[5].mxu0  ;;  %v608_v44 = vpop.f32.mrb[5].mxu1  ;;  %v615_v54 = vadd.f32 %v2577_v52, %v606_v41  ;;  %v3508_v52 = vld [vmem:[%s3834_s1 + $0x4c] ss:$16 sps:$4 sm:$0xff]  }
 0x1fb   :  { %v614_v45 = vadd.f32 %v2576_v39, %v567_v43  ;;  %v569_v46 = vpop.f32.mrb[6].mxu0  ;;  %v610_v47 = vpop.f32.mrb[6].mxu1  ;;  %v616_v51 = vadd.f32 %v2578_v50, %v608_v44  ;;  %v3494_v50 = vld [vmem:[%s3834_s1 + $0x28] ss:$16 sps:$4 sm:$0xff]  }
 0x1fc   :  { %v2611_v48 = vmul.f32 -1.442695, %v613_v42  ;;  %v570_v0 = vpop.f32.mrb[7].mxu0  ;;  %v611_v49 = vpop.f32.mrb[7].mxu1  ;;  %v3460_v46 = vld [vmem:[%s3834_s1 + $0xc] ss:$16 sps:$4 sm:$0xff]  }
 0x1fd   :  { %v2612_v6 = vmul.f32 -1.442695, %v614_v45  ;;  %v2613_v53 = vmul.f32 -1.442695, %v616_v51  ;;  %v3455_v45 = vld [vmem:[%s3834_s1 + $0x4] ss:$16 sps:$4 sm:$0xff]  }
 0x1fe   :  { %2969 = vpow2.f32 %v2611_v48  ;;  %v3465_v47 = vld [vmem:[%s3834_s1] ss:$16 sps:$4 sm:$0xff]   ;;  %v3470_v48 = vld [vmem:[%s3834_s1 + $0x8] ss:$16 sps:$4 sm:$0xff]   ;;  %v3479_v0 = vld [vmem:[%s3834_s1 + $0x24] ss:$16 sps:$4 sm:$0xff]  }
 0x1ff   :  { %2971 = vpow2.f32 %v2612_v6  ;;  %v3484_v49 = vld [vmem:[%s3834_s1 + $0x2c] ss:$16 sps:$4 sm:$0xff]   ;;  %v3489_v6 = vld [vmem:[%s3834_s1 + $0x20] ss:$16 sps:$4 sm:$0xff]   ;;  %v3503_v51 = vld [vmem:[%s3834_s1 + $0x44] ss:$16 sps:$4 sm:$0xff]  }
 0x200   :  { %2973 = vpow2.f32 %v2613_v53  ;;  %v3513_v53 = vld [vmem:[%s3834_s1 + $0x40] ss:$16 sps:$4 sm:$0xff]  }
 0x201   :  { %2975 = vtanh.f32 %v615_v54  ;;  %v3518_v54 = vld [vmem:[%s3834_s1 + $0x48] ss:$16 sps:$4 sm:$0xff]  }
 0x208   :  { %v2970_v55 = vpop.eup %2969 }
 0x209   :  { %v2972_v56 = vpop.eup %2971  ;;  %v620_v57 = vadd.f32 1.0, %v2970_v55  ;;  %v3527_v55 = vld [vmem:[%s3834_s1 + $0x64] ss:$16 sps:$4 sm:$0xff]  }
 0x20a   :  { %v626_v58 = vadd.f32 1.0, %v2972_v56  ;;  %v2974_v59 = vpop.eup %2973  ;;  %v3532_v56 = vld [vmem:[%s3834_s1 + $0x6c] ss:$16 sps:$4 sm:$0xff]  }
 0x20b   :  { %2977 = vrcp.f32 %v620_v57  ;;  %v2976_v60 = vpop.eup %2975  ;;  %v633_v34 = vadd.f32 1.0, %v2974_v59  ;;  %v3537_v57 = vld [vmem:[%s3834_s1 + $0x60] ss:$16 sps:$4 sm:$0xff]  }
 0x20c   :  { %2979 = vrcp.f32 %v626_v58  ;;  %v3542_v58 = vld [vmem:[%s3834_s1 + $0x68] ss:$16 sps:$4 sm:$0xff]   ;;  %v3551_v59 = vld [vmem:[%s3834_s1 + $0x80] ss:$16 sps:$4 sm:$0xff]  }
 0x20d   :  { %2981 = vrcp.f32 %v633_v34  ;;  %v3577_v34 = vld [vmem:[%s3834_s1 + $0xac] ss:$16 sps:$4 sm:$0xff]  }
 0x215   :  { %v2978_v61 = vpop.eup %2977 }
 0x216   :  { %v2980_v62 = vpop.eup %2979  ;;  %v637_v63 = vmul.f32 %v2978_v61, %v2976_v60  ;;  %v3556_v60 = vld [vmem:[%s3834_s1 + $0x84] ss:$16 sps:$4 sm:$0xff]   ;;  %v3561_v61 = vld [vmem:[%s3834_s1 + $0x88] ss:$16 sps:$4 sm:$0xff]  }
 0x217   :  { %v636_v35 = vmul.f32 %v2980_v62, %v3340_v33  ;;  %v2982_v37 = vpop.eup %2981  ;;  %v3566_v62 = vld [vmem:[%s3834_s1 + $0x8c] ss:$16 sps:$4 sm:$0xff]  }
 0x219   :  { %v3393_v36 = vadd.f32 %v637_v63, %v636_v35  ;;  %v3571_v63 = vld [vmem:[%s3834_s1 + $0xa4] ss:$16 sps:$4 sm:$0xff]   ;;  %v3584_v35 = vld [vmem:[%s3834_s1 + $0xa0] ss:$16 sps:$4 sm:$0xff]  }
 0x21b   :  { %2983 = vtanh.f32 %v3393_v36 }
 0x225   :  { %v2984_v38 = vpop.eup %2983 }
 0x226   :  { %v640_v39 = vmul.f32 %v2984_v38, %v2982_v37  ;;  %v3596_v37 = vld [vmem:[%s3834_s1 + $0xc4] ss:$16 sps:$4 sm:$0xff]   ;;  %v3602_v38 = vld [vmem:[%s3834_s1 + $0xcc] ss:$16 sps:$4 sm:$0xff]  }
 0x228   :  { %v643_v40 = vpack.c.bf16 %v640_v39, %v640_v39  ;;  %v3608_v39 = vld [vmem:[%s3834_s1 + $0xc0] ss:$16 sps:$4 sm:$0xff]  }
 0x22a   :  { %2614 = vst [vmem:[%s3836_s2 + $0x4] sm:$0xf] %v643_v40  ;;  %879 = vmatmul.mubr.bf16.vlgmr.msra.gmra.mrb[8].mxu0 %v643_v40  ;;  %920 = vmatmul.mubr.bf16.vlgmr.msra.gmra.mrb[8].mxu1 %v643_v40  ;;  %v3615_v40 = vld [vmem:[%s3834_s1 + $0xc8] ss:$16 sps:$4 sm:$0xff]  }
 0x22b   :  { %1162 = vmatpush1.bf16.msra.mxu0 %v3108_v2  ;;  %1203 = vmatpush1.bf16.msra.mxu1 %v3136_v7  ;;  %v2615_v2 = vld [vmem:[%s3835_s0 + $0x40] sm:$0xff] }
 0x22c   :  { %1163 = vmatprep.subr.bf16.mxu0 %v3114_v3  ;;  %1204 = vmatprep.subr.bf16.mxu1 %v3155_v10  ;;  %v2616_v3 = vld [vmem:[%s3835_s0 + $0x48] sm:$0xff] }
 0x22d   :  { %1193 = vmatprep.mubr.bf16.mxu0 %v3081_v1  ;;  %1234 = vmatprep.mubr.bf16.mxu1 %v3081_v1 }
 0x22f   :  { %1164 = vmatpush1.bf16.msra.mxu0 %v3120_v4  ;;  %1205 = vmatpush1.bf16.msra.mxu1 %v3160_v11 }
 0x230   :  { %1165 = vmatprep.subr.bf16.mxu0 %v3126_v5  ;;  %1206 = vmatprep.subr.bf16.mxu1 %v3177_v14 }
 0x233   :  { %1166 = vmatpush1.bf16.msra.mxu0 %v3142_v8  ;;  %1207 = vmatpush1.bf16.msra.mxu1 %v3184_v15 }
 0x234   :  { %1167 = vmatprep.subr.bf16.mxu0 %v3149_v9  ;;  %1208 = vmatprep.subr.bf16.mxu1 %v3190_v16 }
 0x237   :  { %1168 = vmatpush1.bf16.msra.mxu0 %v3167_v12  ;;  %1209 = vmatpush1.bf16.msra.mxu1 %v3208_v19  ;;  %v2617_v19 = vld [vmem:[%s3835_s0 + $0x50] sm:$0xff] }
 0x238   :  { %1169 = vmatprep.subr.bf16.mxu0 %v3172_v13  ;;  %1210 = vmatprep.subr.bf16.mxu1 %v3214_v20 }
 0x23b   :  { %1170 = vmatpush1.bf16.msra.mxu0 %v3196_v17  ;;  %1211 = vmatpush1.bf16.msra.mxu1 %v3232_v23  ;;  %v2618_v17 = vld [vmem:[%s3835_s0 + $0x58] sm:$0xff] }
 0x23c   :  { %1171 = vmatprep.subr.bf16.mxu0 %v3202_v18  ;;  %1212 = vmatprep.subr.bf16.mxu1 %v3243_v25 }
 0x23f   :  { %1172 = vmatpush1.bf16.msra.mxu0 %v3220_v21  ;;  %1213 = vmatpush1.bf16.msra.mxu1 %v3253_v27 }
 0x240   :  { %1173 = vmatprep.subr.bf16.mxu0 %v3225_v22  ;;  %1214 = vmatprep.subr.bf16.mxu1 %v3259_v28 }
 0x243   :  { %1174 = vmatpush1.bf16.msra.mxu0 %v3237_v24  ;;  %1215 = vmatpush1.bf16.msra.mxu1 %v3272_v30 }
 0x244   :  { %1175 = vmatprep.subr.bf16.mxu0 %v3248_v26  ;;  %1216 = vmatprep.subr.bf16.mxu1 %v3278_v31 }
 0x247   :  { %1176 = vmatpush1.bf16.msra.mxu0 %v3266_v29  ;;  %1217 = vmatpush1.bf16.msra.mxu1 %v3288_v32 }
 0x248   :  { %1476 = vmatprep.subr.bf16.mxu0 %v3455_v45  ;;  %1517 = vmatprep.subr.bf16.mxu1 %v3460_v46 }
 0x2fd   :  { %v880_v4 = vpop.f32.mrb[8].mxu0  ;;  %v921_v5 = vpop.f32.mrb[8].mxu1 }
 0x2fe   :  { %v928_v7 = vadd.f32 %v2615_v2, %v880_v4  ;;  %v882_v8 = vpop.f32.mrb[9].mxu0  ;;  %v923_v9 = vpop.f32.mrb[9].mxu1  ;;  %v930_v21 = vadd.f32 %v2617_v19, %v921_v5  ;;  %v3620_v2 = vld [vmem:[%s3834_s1 + $0xe4] ss:$16 sps:$4 sm:$0xff]   ;;  %v3632_v4 = vld [vmem:[%s3834_s1 + $0xe0] ss:$16 sps:$4 sm:$0xff]  }
 0x2ff   :  { %v929_v10 = vadd.f32 %v2616_v3, %v882_v8  ;;  %v884_v11 = vpop.f32.mrb[10].mxu0  ;;  %v925_v12 = vpop.f32.mrb[10].mxu1  ;;  %v931_v18 = vadd.f32 %v2618_v17, %v923_v9  ;;  %v3626_v3 = vld [vmem:[%s3834_s1 + $0xec] ss:$16 sps:$4 sm:$0xff]   ;;  %v3639_v5 = vld [vmem:[%s3834_s1 + $0xe8] ss:$16 sps:$4 sm:$0xff]  }
 0x300   :  { %v2651_v13 = vmul.f32 -1.442695, %v928_v7  ;;  %v885_v14 = vpop.f32.mrb[11].mxu0  ;;  %v926_v15 = vpop.f32.mrb[11].mxu1  ;;  %v2655_v7 = vld [vmem:[%s3835_s0 + $0x60] sm:$0xff]  ;;  %v2656_v8 = vld [vmem:[%s3835_s0 + $0x68] sm:$0xff] }
 0x301   :  { %v2652_v16 = vmul.f32 -1.442695, %v929_v10  ;;  %v2653_v20 = vmul.f32 -1.442695, %v931_v18 }
 0x302   :  { %2985 = vpow2.f32 %v2651_v13 }
 0x303   :  { %2987 = vpow2.f32 %v2652_v16 }
 0x304   :  { %2989 = vpow2.f32 %v2653_v20 }
 0x305   :  { %2991 = vtanh.f32 %v930_v21  ;;  %v2658_v21 = vld [vmem:[%s3835_s0 + $0x78] sm:$0xff] }
 0x30c   :  { %v2986_v22 = vpop.eup %2985 }
 0x30d   :  { %v2988_v23 = vpop.eup %2987  ;;  %v935_v24 = vadd.f32 1.0, %v2986_v22 }
 0x30e   :  { %v941_v25 = vadd.f32 1.0, %v2988_v23  ;;  %v2990_v26 = vpop.eup %2989  ;;  %v2657_v23 = vld [vmem:[%s3835_s0 + $0x70] sm:$0xff] }
 0x30f   :  { %2993 = vrcp.f32 %v935_v24  ;;  %v2992_v27 = vpop.eup %2991  ;;  %v948_v31 = vadd.f32 1.0, %v2990_v26 }
 0x310   :  { %2995 = vrcp.f32 %v941_v25 }
 0x311   :  { %2997 = vrcp.f32 %v948_v31 }
 0x319   :  { %v2994_v28 = vpop.eup %2993 }
 0x31a   :  { %v2996_v29 = vpop.eup %2995  ;;  %v952_v30 = vmul.f32 %v2994_v28, %v2992_v27 }
 0x31b   :  { %v951_v32 = vmul.f32 %v2996_v29, %v3393_v36  ;;  %v2998_v41 = vpop.eup %2997  ;;  %v3591_v36 = vld [vmem:[%s3834_s1 + $0xa8] ss:$16 sps:$4 sm:$0xff]  }
 0x31d   :  { %v3444_v33 = vadd.f32 %v952_v30, %v951_v32 }
 0x31f   :  { %2999 = vtanh.f32 %v3444_v33 }
 0x329   :  { %v3000_v42 = vpop.eup %2999 }
 0x32a   :  { %v955_v43 = vmul.f32 %v3000_v42, %v2998_v41 }
 0x32c   :  { %v958_v44 = vpack.c.bf16 %v955_v43, %v955_v43 }
 0x32e   :  { %2654 = vst [vmem:[%s3836_s2 + $0x8] sm:$0xf] %v958_v44  ;;  %1194 = vmatmul.mubr.bf16.vlgmr.msra.gmra.mrb[12].mxu0 %v958_v44  ;;  %1235 = vmatmul.mubr.bf16.vlgmr.msra.gmra.mrb[12].mxu1 %v958_v44 }
 0x32f   :  { %1508 = vmatprep.mubr.bf16.mxu0 %v3081_v1  ;;  %1549 = vmatprep.mubr.bf16.mxu1 %v3081_v1 }
 0x330   :  { %1477 = vmatpush1.bf16.msra.mxu0 %v3465_v47  ;;  %1518 = vmatpush1.bf16.msra.mxu1 %v3470_v48 }
 0x331   :  { %1478 = vmatprep.subr.bf16.mxu0 %v3479_v0  ;;  %1519 = vmatprep.subr.bf16.mxu1 %v3484_v49 }
 0x334   :  { %1479 = vmatpush1.bf16.msra.mxu0 %v3489_v6  ;;  %1520 = vmatpush1.bf16.msra.mxu1 %v3494_v50 }
 0x335   :  { %1480 = vmatprep.subr.bf16.mxu0 %v3503_v51  ;;  %1521 = vmatprep.subr.bf16.mxu1 %v3508_v52 }
 0x338   :  { %1481 = vmatpush1.bf16.msra.mxu0 %v3513_v53  ;;  %1522 = vmatpush1.bf16.msra.mxu1 %v3518_v54 }
 0x339   :  { %1482 = vmatprep.subr.bf16.mxu0 %v3527_v55  ;;  %1523 = vmatprep.subr.bf16.mxu1 %v3532_v56 }
 0x33c   :  { %1483 = vmatpush1.bf16.msra.mxu0 %v3537_v57  ;;  %1524 = vmatpush1.bf16.msra.mxu1 %v3542_v58 }
 0x33d   :  { %1484 = vmatprep.subr.bf16.mxu0 %v3556_v60  ;;  %1525 = vmatprep.subr.bf16.mxu1 %v3566_v62 }
 0x340   :  { %1485 = vmatpush1.bf16.msra.mxu0 %v3551_v59  ;;  %1526 = vmatpush1.bf16.msra.mxu1 %v3561_v61 }
 0x341   :  { %1486 = vmatprep.subr.bf16.mxu0 %v3571_v63  ;;  %1527 = vmatprep.subr.bf16.mxu1 %v3577_v34 }
 0x344   :  { %1487 = vmatpush1.bf16.msra.mxu0 %v3584_v35  ;;  %1528 = vmatpush1.bf16.msra.mxu1 %v3591_v36 }
 0x345   :  { %1488 = vmatprep.subr.bf16.mxu0 %v3596_v37  ;;  %1529 = vmatprep.subr.bf16.mxu1 %v3602_v38 }
 0x348   :  { %1489 = vmatpush1.bf16.msra.mxu0 %v3608_v39  ;;  %1530 = vmatpush1.bf16.msra.mxu1 %v3615_v40 }
 0x349   :  { %1490 = vmatprep.subr.bf16.mxu0 %v3620_v2  ;;  %1531 = vmatprep.subr.bf16.mxu1 %v3626_v3 }
 0x34c   :  { %1491 = vmatpush1.bf16.msra.mxu0 %v3632_v4  ;;  %1532 = vmatpush1.bf16.msra.mxu1 %v3639_v5 }
 0x34d   :  { %1791 = vmatprep.subr.bf16.mxu0 %v3455_v45  ;;  %1832 = vmatprep.subr.bf16.mxu1 %v3460_v46 }
 0x401   :  { %v1195_v9 = vpop.f32.mrb[12].mxu0  ;;  %v1236_v10 = vpop.f32.mrb[12].mxu1 }
 0x402   :  { %v1243_v11 = vadd.f32 %v2655_v7, %v1195_v9  ;;  %v1197_v12 = vpop.f32.mrb[13].mxu0  ;;  %v1238_v13 = vpop.f32.mrb[13].mxu1  ;;  %v1245_v25 = vadd.f32 %v2657_v23, %v1236_v10 }
 0x403   :  { %v1244_v14 = vadd.f32 %v2656_v8, %v1197_v12  ;;  %v1199_v15 = vpop.f32.mrb[14].mxu0  ;;  %v1240_v16 = vpop.f32.mrb[14].mxu1  ;;  %v1246_v22 = vadd.f32 %v2658_v21, %v1238_v13  ;;  %v2696_v12 = vld [vmem:[%s3835_s0 + $0x88] sm:$0xff] }
 0x404   :  { %v2691_v17 = vmul.f32 -1.442695, %v1243_v11  ;;  %v1200_v18 = vpop.f32.mrb[15].mxu0  ;;  %v1241_v19 = vpop.f32.mrb[15].mxu1 }
 0x405   :  { %v2692_v20 = vmul.f32 -1.442695, %v1244_v14  ;;  %v2693_v24 = vmul.f32 -1.442695, %v1246_v22 }
 0x406   :  { %3001 = vpow2.f32 %v2691_v17 }
 0x407   :  { %3003 = vpow2.f32 %v2692_v20 }
 0x408   :  { %3005 = vpow2.f32 %v2693_v24 }
 0x409   :  { %3007 = vtanh.f32 %v1245_v25  ;;  %v2698_v25 = vld [vmem:[%s3835_s0 + $0x98] sm:$0xff] }
 0x410   :  { %v3002_v26 = vpop.eup %3001 }
 0x411   :  { %v3004_v27 = vpop.eup %3003  ;;  %v1250_v28 = vadd.f32 1.0, %v3002_v26 }
 0x412   :  { %v1256_v29 = vadd.f32 1.0, %v3004_v27  ;;  %v3006_v30 = vpop.eup %3005  ;;  %v2697_v27 = vld [vmem:[%s3835_s0 + $0x90] sm:$0xff] }
 0x413   :  { %3009 = vrcp.f32 %v1250_v28  ;;  %v3008_v31 = vpop.eup %3007  ;;  %v1263_v43 = vadd.f32 1.0, %v3006_v30 }
 0x414   :  { %3011 = vrcp.f32 %v1256_v29 }
 0x415   :  { %3013 = vrcp.f32 %v1263_v43 }
 0x41d   :  { %v3010_v32 = vpop.eup %3009 }
 0x41e   :  { %v3012_v41 = vpop.eup %3011  ;;  %v1267_v42 = vmul.f32 %v3010_v32, %v3008_v31 }
 0x41f   :  { %v1266_v44 = vmul.f32 %v3012_v41, %v3444_v33  ;;  %v3014_v8 = vpop.eup %3013  ;;  %v2695_v33 = vld [vmem:[%s3835_s0 + $0x80] sm:$0xff] }
 0x421   :  { %v3659_v7 = vadd.f32 %v1267_v42, %v1266_v44 }
 0x423   :  { %3015 = vtanh.f32 %v3659_v7 }
 0x42d   :  { %v3016_v9 = vpop.eup %3015 }
 0x42e   :  { %v1270_v10 = vmul.f32 %v3016_v9, %v3014_v8 }
 0x430   :  { %v1273_v11 = vpack.c.bf16 %v1270_v10, %v1270_v10 }
 0x432   :  { %2694 = vst [vmem:[%s3836_s2 + $0xc] sm:$0xf] %v1273_v11  ;;  %1509 = vmatmul.mubr.bf16.vlgmr.msra.gmra.mrb[16].mxu0 %v1273_v11  ;;  %1550 = vmatmul.mubr.bf16.vlgmr.msra.gmra.mrb[16].mxu1 %v1273_v11 }
 0x433   :  { %1792 = vmatpush1.bf16.msra.mxu0 %v3465_v47  ;;  %1833 = vmatpush1.bf16.msra.mxu1 %v3470_v48 }
 0x434   :  { %1793 = vmatprep.subr.bf16.mxu0 %v3479_v0  ;;  %1834 = vmatprep.subr.bf16.mxu1 %v3484_v49 }
 0x435   :  { %1823 = vmatprep.mubr.bf16.mxu0 %v3081_v1  ;;  %1864 = vmatprep.mubr.bf16.mxu1 %v3081_v1 }
 0x437   :  { %1794 = vmatpush1.bf16.msra.mxu0 %v3489_v6  ;;  %1835 = vmatpush1.bf16.msra.mxu1 %v3494_v50 }
 0x438   :  { %1795 = vmatprep.subr.bf16.mxu0 %v3503_v51  ;;  %1836 = vmatprep.subr.bf16.mxu1 %v3508_v52 }
 0x43b   :  { %1796 = vmatpush1.bf16.msra.mxu0 %v3513_v53  ;;  %1837 = vmatpush1.bf16.msra.mxu1 %v3518_v54 }
 0x43c   :  { %1797 = vmatprep.subr.bf16.mxu0 %v3527_v55  ;;  %1838 = vmatprep.subr.bf16.mxu1 %v3532_v56 }
 0x43f   :  { %1798 = vmatpush1.bf16.msra.mxu0 %v3537_v57  ;;  %1839 = vmatpush1.bf16.msra.mxu1 %v3542_v58 }
 0x440   :  { %1799 = vmatprep.subr.bf16.mxu0 %v3556_v60  ;;  %1840 = vmatprep.subr.bf16.mxu1 %v3566_v62 }
 0x443   :  { %1800 = vmatpush1.bf16.msra.mxu0 %v3551_v59  ;;  %1841 = vmatpush1.bf16.msra.mxu1 %v3561_v61 }
 0x444   :  { %1801 = vmatprep.subr.bf16.mxu0 %v3571_v63  ;;  %1842 = vmatprep.subr.bf16.mxu1 %v3577_v34 }
 0x447   :  { %1802 = vmatpush1.bf16.msra.mxu0 %v3584_v35  ;;  %1843 = vmatpush1.bf16.msra.mxu1 %v3591_v36 }
 0x448   :  { %1803 = vmatprep.subr.bf16.mxu0 %v3596_v37  ;;  %1844 = vmatprep.subr.bf16.mxu1 %v3602_v38 }
 0x44b   :  { %1804 = vmatpush1.bf16.msra.mxu0 %v3608_v39  ;;  %1845 = vmatpush1.bf16.msra.mxu1 %v3615_v40 }
 0x44c   :  { %1805 = vmatprep.subr.bf16.mxu0 %v3620_v2  ;;  %1846 = vmatprep.subr.bf16.mxu1 %v3626_v3 }
 0x44f   :  { %1806 = vmatpush1.bf16.msra.mxu0 %v3632_v4  ;;  %1847 = vmatpush1.bf16.msra.mxu1 %v3639_v5 }
 0x450   :  { %2106 = vmatprep.subr.bf16.mxu0 %v3455_v45  ;;  %2147 = vmatprep.subr.bf16.mxu1 %v3460_v46 }
 0x505   :  { %v1510_v13 = vpop.f32.mrb[16].mxu0  ;;  %v1551_v14 = vpop.f32.mrb[16].mxu1 }
 0x506   :  { %v1558_v15 = vadd.f32 %v2695_v33, %v1510_v13  ;;  %v1512_v16 = vpop.f32.mrb[17].mxu0  ;;  %v1553_v17 = vpop.f32.mrb[17].mxu1  ;;  %v1560_v29 = vadd.f32 %v2697_v27, %v1551_v14  ;;  %v2738_v27 = vld [vmem:[%s3835_s0 + $0xb8] sm:$0xff] }
 0x507   :  { %v1559_v18 = vadd.f32 %v2696_v12, %v1512_v16  ;;  %v1514_v19 = vpop.f32.mrb[18].mxu0  ;;  %v1555_v20 = vpop.f32.mrb[18].mxu1  ;;  %v1561_v26 = vadd.f32 %v2698_v25, %v1553_v17  ;;  %v2736_v16 = vld [vmem:[%s3835_s0 + $0xa8] sm:$0xff] }
 0x508   :  { %v2731_v21 = vmul.f32 -1.442695, %v1558_v15  ;;  %v1515_v22 = vpop.f32.mrb[19].mxu0  ;;  %v1556_v23 = vpop.f32.mrb[19].mxu1 }
 0x509   :  { %v2732_v24 = vmul.f32 -1.442695, %v1559_v18  ;;  %v2733_v28 = vmul.f32 -1.442695, %v1561_v26 }
 0x50a   :  { %3017 = vpow2.f32 %v2731_v21 }
 0x50b   :  { %3019 = vpow2.f32 %v2732_v24 }
 0x50c   :  { %3021 = vpow2.f32 %v2733_v28 }
 0x50d   :  { %3023 = vtanh.f32 %v1560_v29  ;;  %v2737_v29 = vld [vmem:[%s3835_s0 + $0xb0] sm:$0xff] }
 0x514   :  { %v3018_v30 = vpop.eup %3017 }
 0x515   :  { %v3020_v31 = vpop.eup %3019  ;;  %v1565_v32 = vadd.f32 1.0, %v3018_v30 }
 0x516   :  { %v1571_v41 = vadd.f32 1.0, %v3020_v31  ;;  %v3022_v42 = vpop.eup %3021 }
 0x517   :  { %3025 = vrcp.f32 %v1565_v32  ;;  %v3024_v43 = vpop.eup %3023  ;;  %v1578_v10 = vadd.f32 1.0, %v3022_v42 }
 0x518   :  { %3027 = vrcp.f32 %v1571_v41 }
 0x519   :  { %3029 = vrcp.f32 %v1578_v10 }
 0x521   :  { %v3026_v44 = vpop.eup %3025 }
 0x522   :  { %v3028_v8 = vpop.eup %3027  ;;  %v1582_v9 = vmul.f32 %v3026_v44, %v3024_v43 }
 0x523   :  { %v1581_v11 = vmul.f32 %v3028_v8, %v3659_v7  ;;  %v3030_v12 = vpop.eup %3029  ;;  %v2735_v7 = vld [vmem:[%s3835_s0 + $0xa0] sm:$0xff] }
 0x525   :  { %v3712_v33 = vadd.f32 %v1582_v9, %v1581_v11 }
 0x527   :  { %3031 = vtanh.f32 %v3712_v33 }
 0x531   :  { %v3032_v13 = vpop.eup %3031 }
 0x532   :  { %v1585_v14 = vmul.f32 %v3032_v13, %v3030_v12 }
 0x534   :  { %v1588_v15 = vpack.c.bf16 %v1585_v14, %v1585_v14 }
 0x536   :  { %2734 = vst [vmem:[%s3836_s2 + $0x10] sm:$0xf] %v1588_v15  ;;  %1824 = vmatmul.mubr.bf16.vlgmr.msra.gmra.mrb[20].mxu0 %v1588_v15  ;;  %1865 = vmatmul.mubr.bf16.vlgmr.msra.gmra.mrb[20].mxu1 %v1588_v15 }
 0x537   :  { %2107 = vmatpush1.bf16.msra.mxu0 %v3465_v47  ;;  %2148 = vmatpush1.bf16.msra.mxu1 %v3470_v48 }
 0x538   :  { %2108 = vmatprep.subr.bf16.mxu0 %v3479_v0  ;;  %2149 = vmatprep.subr.bf16.mxu1 %v3484_v49 }
 0x539   :  { %2138 = vmatprep.mubr.bf16.mxu0 %v3081_v1  ;;  %2179 = vmatprep.mubr.bf16.mxu1 %v3081_v1 }
 0x53b   :  { %2109 = vmatpush1.bf16.msra.mxu0 %v3489_v6  ;;  %2150 = vmatpush1.bf16.msra.mxu1 %v3494_v50 }
 0x53c   :  { %2110 = vmatprep.subr.bf16.mxu0 %v3503_v51  ;;  %2151 = vmatprep.subr.bf16.mxu1 %v3508_v52 }
 0x53f   :  { %2111 = vmatpush1.bf16.msra.mxu0 %v3513_v53  ;;  %2152 = vmatpush1.bf16.msra.mxu1 %v3518_v54 }
 0x540   :  { %2112 = vmatprep.subr.bf16.mxu0 %v3527_v55  ;;  %2153 = vmatprep.subr.bf16.mxu1 %v3532_v56 }
 0x543   :  { %2113 = vmatpush1.bf16.msra.mxu0 %v3537_v57  ;;  %2154 = vmatpush1.bf16.msra.mxu1 %v3542_v58 }
 0x544   :  { %2114 = vmatprep.subr.bf16.mxu0 %v3556_v60  ;;  %2155 = vmatprep.subr.bf16.mxu1 %v3566_v62 }
 0x547   :  { %2115 = vmatpush1.bf16.msra.mxu0 %v3551_v59  ;;  %2156 = vmatpush1.bf16.msra.mxu1 %v3561_v61 }
 0x548   :  { %2116 = vmatprep.subr.bf16.mxu0 %v3571_v63  ;;  %2157 = vmatprep.subr.bf16.mxu1 %v3577_v34 }
 0x54b   :  { %2117 = vmatpush1.bf16.msra.mxu0 %v3584_v35  ;;  %2158 = vmatpush1.bf16.msra.mxu1 %v3591_v36 }
 0x54c   :  { %2118 = vmatprep.subr.bf16.mxu0 %v3596_v37  ;;  %2159 = vmatprep.subr.bf16.mxu1 %v3602_v38 }
 0x54f   :  { %2119 = vmatpush1.bf16.msra.mxu0 %v3608_v39  ;;  %2160 = vmatpush1.bf16.msra.mxu1 %v3615_v40 }
 0x550   :  { %2120 = vmatprep.subr.bf16.mxu0 %v3620_v2  ;;  %2161 = vmatprep.subr.bf16.mxu1 %v3626_v3 }
 0x553   :  { %2121 = vmatpush1.bf16.msra.mxu0 %v3632_v4  ;;  %2162 = vmatpush1.bf16.msra.mxu1 %v3639_v5 }
 0x554   :  { %2421 = vmatprep.subr.bf16.mxu0 %v3455_v45  ;;  %2462 = vmatprep.subr.bf16.mxu1 %v3460_v46 }
 0x609   :  { %v1825_v17 = vpop.f32.mrb[20].mxu0  ;;  %v1866_v18 = vpop.f32.mrb[20].mxu1 }
 0x60a   :  { %v1873_v19 = vadd.f32 %v2735_v7, %v1825_v17  ;;  %v1827_v20 = vpop.f32.mrb[21].mxu0  ;;  %v1868_v21 = vpop.f32.mrb[21].mxu1  ;;  %v1875_v31 = vadd.f32 %v2737_v29, %v1866_v18 }
 0x60b   :  { %v1874_v22 = vadd.f32 %v2736_v16, %v1827_v20  ;;  %v1829_v23 = vpop.f32.mrb[22].mxu0  ;;  %v1870_v24 = vpop.f32.mrb[22].mxu1  ;;  %v1876_v28 = vadd.f32 %v2738_v27, %v1868_v21  ;;  %v2815_v21 = vld [vmem:[%s3835_s0 + $0xe0] sm:$0xff] }
 0x60c   :  { %v2771_v25 = vmul.f32 -1.442695, %v1873_v19  ;;  %v1830_v45 = vpop.f32.mrb[23].mxu0  ;;  %v1871_v26 = vpop.f32.mrb[23].mxu1 }
 0x60d   :  { %v2772_v46 = vmul.f32 -1.442695, %v1874_v22  ;;  %v2773_v30 = vmul.f32 -1.442695, %v1876_v28  ;;  %v2816_v22 = vld [vmem:[%s3835_s0 + $0xe8] sm:$0xff] }
 0x60e   :  { %3033 = vpow2.f32 %v2771_v25 }
 0x60f   :  { %3035 = vpow2.f32 %v2772_v46 }
 0x610   :  { %3037 = vpow2.f32 %v2773_v30 }
 0x611   :  { %3039 = vtanh.f32 %v1875_v31 }
 0x618   :  { %v3034_v32 = vpop.eup %3033 }
 0x619   :  { %v3036_v41 = vpop.eup %3035  ;;  %v1880_v42 = vadd.f32 1.0, %v3034_v32 }
 0x61a   :  { %v1886_v43 = vadd.f32 1.0, %v3036_v41  ;;  %v3038_v44 = vpop.eup %3037  ;;  %v2818_v41 = vld [vmem:[%s3835_s0 + $0xf8] sm:$0xff] }
 0x61b   :  { %3041 = vrcp.f32 %v1880_v42  ;;  %v3040_v8 = vpop.eup %3039  ;;  %v1893_v12 = vadd.f32 1.0, %v3038_v44 }
 0x61c   :  { %3043 = vrcp.f32 %v1886_v43  ;;  %v2817_v43 = vld [vmem:[%s3835_s0 + $0xf0] sm:$0xff] }
 0x61d   :  { %3045 = vrcp.f32 %v1893_v12 }
 0x625   :  { %v3042_v9 = vpop.eup %3041 }
 0x626   :  { %v3044_v10 = vpop.eup %3043  ;;  %v1897_v11 = vmul.f32 %v3042_v9, %v3040_v8 }
 0x627   :  { %v1896_v13 = vmul.f32 %v3044_v10, %v3712_v33  ;;  %v3046_v15 = vpop.eup %3045 }
 0x629   :  { %v3765_v14 = vadd.f32 %v1897_v11, %v1896_v13 }
 0x62b   :  { %3047 = vtanh.f32 %v3765_v14 }
 0x635   :  { %v3048_v7 = vpop.eup %3047 }
 0x636   :  { %v1900_v16 = vmul.f32 %v3048_v7, %v3046_v15 }
 0x638   :  { %v1903_v17 = vpack.c.bf16 %v1900_v16, %v1900_v16 }
 0x63a   :  { %2774 = vst [vmem:[%s3836_s2 + $0x14] sm:$0xf] %v1903_v17  ;;  %2139 = vmatmul.mubr.bf16.vlgmr.msra.gmra.mrb[24].mxu0 %v1903_v17  ;;  %2180 = vmatmul.mubr.bf16.vlgmr.msra.gmra.mrb[24].mxu1 %v1903_v17 }
 0x63b   :  { %2422 = vmatpush1.bf16.msra.mxu0 %v3465_v47  ;;  %2463 = vmatpush1.bf16.msra.mxu1 %v3470_v48  ;;  %v2776_v47 = vld [vmem:[%s3835_s0 + $0xc8] sm:$0xff] }
 0x63c   :  { %2423 = vmatprep.subr.bf16.mxu0 %v3479_v0  ;;  %2464 = vmatprep.subr.bf16.mxu1 %v3484_v49 }
 0x63d   :  { %2453 = vmatprep.mubr.bf16.mxu0 %v3081_v1  ;;  %2494 = vmatprep.mubr.bf16.mxu1 %v3081_v1  ;;  %v2775_v1 = vld [vmem:[%s3835_s0 + $0xc0] sm:$0xff] }
 0x63f   :  { %2424 = vmatpush1.bf16.msra.mxu0 %v3489_v6  ;;  %2465 = vmatpush1.bf16.msra.mxu1 %v3494_v50 }
 0x640   :  { %2425 = vmatprep.subr.bf16.mxu0 %v3503_v51  ;;  %2466 = vmatprep.subr.bf16.mxu1 %v3508_v52 }
 0x643   :  { %2426 = vmatpush1.bf16.msra.mxu0 %v3513_v53  ;;  %2467 = vmatpush1.bf16.msra.mxu1 %v3518_v54 }
 0x644   :  { %2427 = vmatprep.subr.bf16.mxu0 %v3527_v55  ;;  %2468 = vmatprep.subr.bf16.mxu1 %v3532_v56 }
 0x647   :  { %2428 = vmatpush1.bf16.msra.mxu0 %v3537_v57  ;;  %2469 = vmatpush1.bf16.msra.mxu1 %v3542_v58  ;;  %v2778_v58 = vld [vmem:[%s3835_s0 + $0xd8] sm:$0xff] }
 0x648   :  { %2429 = vmatprep.subr.bf16.mxu0 %v3556_v60  ;;  %2470 = vmatprep.subr.bf16.mxu1 %v3566_v62  ;;  %v2777_v60 = vld [vmem:[%s3835_s0 + $0xd0] sm:$0xff] }
 0x64b   :  { %2430 = vmatpush1.bf16.msra.mxu0 %v3551_v59  ;;  %2471 = vmatpush1.bf16.msra.mxu1 %v3561_v61 }
 0x64c   :  { %2431 = vmatprep.subr.bf16.mxu0 %v3571_v63  ;;  %2472 = vmatprep.subr.bf16.mxu1 %v3577_v34 }
 0x64f   :  { %2432 = vmatpush1.bf16.msra.mxu0 %v3584_v35  ;;  %2473 = vmatpush1.bf16.msra.mxu1 %v3591_v36 }
 0x650   :  { %2433 = vmatprep.subr.bf16.mxu0 %v3596_v37  ;;  %2474 = vmatprep.subr.bf16.mxu1 %v3602_v38 }
 0x653   :  { %2434 = vmatpush1.bf16.msra.mxu0 %v3608_v39  ;;  %2475 = vmatpush1.bf16.msra.mxu1 %v3615_v40 }
 0x654   :  { %2435 = vmatprep.subr.bf16.mxu0 %v3620_v2  ;;  %2476 = vmatprep.subr.bf16.mxu1 %v3626_v3 }
 0x657   :  { %2436 = vmatpush1.bf16.msra.mxu0 %v3632_v4  ;;  %2477 = vmatpush1.bf16.msra.mxu1 %v3639_v5 }
 0x70d   :  { %v2140_v48 = vpop.f32.mrb[24].mxu0  ;;  %v2181_v0 = vpop.f32.mrb[24].mxu1 }
 0x70e   :  { %v2188_v49 = vadd.f32 %v2775_v1, %v2140_v48  ;;  %v2142_v6 = vpop.f32.mrb[25].mxu0  ;;  %v2183_v50 = vpop.f32.mrb[25].mxu1  ;;  %v2190_v62 = vadd.f32 %v2777_v60, %v2181_v0 }
 0x70f   :  { %v2189_v51 = vadd.f32 %v2776_v47, %v2142_v6  ;;  %v2144_v52 = vpop.f32.mrb[26].mxu0  ;;  %v2185_v53 = vpop.f32.mrb[26].mxu1  ;;  %v2191_v59 = vadd.f32 %v2778_v58, %v2183_v50 }
 0x710   :  { %v2811_v54 = vmul.f32 -1.442695, %v2188_v49  ;;  %v2145_v55 = vpop.f32.mrb[27].mxu0  ;;  %v2186_v56 = vpop.f32.mrb[27].mxu1 }
 0x711   :  { %v2812_v57 = vmul.f32 -1.442695, %v2189_v51  ;;  %v2813_v61 = vmul.f32 -1.442695, %v2191_v59 }
 0x712   :  { %3049 = vpow2.f32 %v2811_v54 }
 0x713   :  { %3051 = vpow2.f32 %v2812_v57 }
 0x714   :  { %3053 = vpow2.f32 %v2813_v61 }
 0x715   :  { %3055 = vtanh.f32 %v2190_v62 }
 0x71c   :  { %v3050_v63 = vpop.eup %3049 }
 0x71d   :  { %v3052_v34 = vpop.eup %3051  ;;  %v2195_v35 = vadd.f32 1.0, %v3050_v63 }
 0x71e   :  { %v2201_v36 = vadd.f32 1.0, %v3052_v34  ;;  %v3054_v37 = vpop.eup %3053 }
 0x71f   :  { %3057 = vrcp.f32 %v2195_v35  ;;  %v3056_v38 = vpop.eup %3055  ;;  %v2208_v3 = vadd.f32 1.0, %v3054_v37 }
 0x720   :  { %3059 = vrcp.f32 %v2201_v36 }
 0x721   :  { %3061 = vrcp.f32 %v2208_v3 }
 0x729   :  { %v3058_v39 = vpop.eup %3057 }
 0x72a   :  { %v3060_v40 = vpop.eup %3059  ;;  %v2212_v2 = vmul.f32 %v3058_v39, %v3056_v38 }
 0x72b   :  { %v2211_v4 = vmul.f32 %v3060_v40, %v3765_v14  ;;  %v3062_v33 = vpop.eup %3061 }
 0x72d   :  { %v2213_v5 = vadd.f32 %v2212_v2, %v2211_v4 }
 0x72f   :  { %3063 = vtanh.f32 %v2213_v5 }
 0x739   :  { %v3064_v18 = vpop.eup %3063 }
 0x73a   :  { %v2215_v19 = vmul.f32 %v3064_v18, %v3062_v33 }
 0x73c   :  { %v2218_v20 = vpack.c.bf16 %v2215_v19, %v2215_v19 }
 0x73e   :  { %2814 = vst [vmem:[%s3836_s2 + $0x18] sm:$0xf] %v2218_v20  ;;  %2454 = vmatmul.mubr.bf16.vlgmr.msra.gmra.mrb[28].mxu0 %v2218_v20  ;;  %2495 = vmatmul.mubr.bf16.vlgmr.msra.gmra.mrb[28].mxu1 %v2218_v20 }
 0x811   :  { %v2455_v23 = vpop.f32.mrb[28].mxu0  ;;  %v2496_v24 = vpop.f32.mrb[28].mxu1 }
 0x812   :  { %v2503_v25 = vadd.f32 %v2815_v21, %v2455_v23  ;;  %v2457_v45 = vpop.f32.mrb[29].mxu0  ;;  %v2498_v26 = vpop.f32.mrb[29].mxu1  ;;  %v2505_v8 = vadd.f32 %v2817_v43, %v2496_v24 }
 0x813   :  { %v2504_v46 = vadd.f32 %v2816_v22, %v2457_v45  ;;  %v2459_v27 = vpop.f32.mrb[30].mxu0  ;;  %v2500_v28 = vpop.f32.mrb[30].mxu1  ;;  %v2506_v42 = vadd.f32 %v2818_v41, %v2498_v26 }
 0x814   :  { %v2851_v29 = vmul.f32 -1.442695, %v2503_v25  ;;  %v2460_v30 = vpop.f32.mrb[31].mxu0  ;;  %v2501_v31 = vpop.f32.mrb[31].mxu1 }
 0x815   :  { %v2852_v32 = vmul.f32 -1.442695, %v2504_v46  ;;  %v2853_v44 = vmul.f32 -1.442695, %v2506_v42 }
 0x816   :  { %3065 = vpow2.f32 %v2851_v29 }
 0x817   :  { %3067 = vpow2.f32 %v2852_v32 }
 0x818   :  { %3069 = vpow2.f32 %v2853_v44 }
 0x819   :  { %3071 = vtanh.f32 %v2505_v8 }
 0x820   :  { %v3066_v9 = vpop.eup %3065 }
 0x821   :  { %v3068_v10 = vpop.eup %3067  ;;  %v2510_v11 = vadd.f32 1.0, %v3066_v9 }
 0x822   :  { %v2516_v12 = vadd.f32 1.0, %v3068_v10  ;;  %v3070_v13 = vpop.eup %3069 }
 0x823   :  { %3073 = vrcp.f32 %v2510_v11  ;;  %v3072_v14 = vpop.eup %3071  ;;  %v2523_v17 = vadd.f32 1.0, %v3070_v13 }
 0x824   :  { %3075 = vrcp.f32 %v2516_v12 }
 0x825   :  { %3077 = vrcp.f32 %v2523_v17 }
 0x82d   :  { %v3074_v15 = vpop.eup %3073 }
 0x82e   :  { %v3076_v7 = vpop.eup %3075  ;;  %v2527_v16 = vmul.f32 %v3074_v15, %v3072_v14 }
 0x82f   :  { %v2526_v1 = vmul.f32 %v3076_v7, %v2213_v5  ;;  %v3078_v48 = vpop.eup %3077 }
 0x831   :  { %v2528_v47 = vadd.f32 %v2527_v16, %v2526_v1 }
 0x833   :  { %3079 = vtanh.f32 %v2528_v47 }
 0x83d   :  { %v3080_v0 = vpop.eup %3079 }
 0x83e   :  { %v2530_v49 = vmul.f32 %v3080_v0, %v3078_v48 }
 0x840   :  { %v2533_v6 = vpack.c.bf16 %v2530_v49, %v2530_v49 }
 0x842   :  { %2854 = vst [vmem:[%s3836_s2 + $0x1c] sm:$0xf] %v2533_v6 }

</bundles_post_ra>
